<compile_context>
chip_gen: v5e
topology: v5e:2x2
jax: 0.10.0
libtpu: 0.0.40
codegen_flags: <defaults>
</compile_context>

<pallas_src>
import functools
import math
import warnings

import jax
import jax.numpy as jnp
from jax.experimental import pallas as pl
from jax.experimental.pallas import tpu as pltpu

LANE = 128
BF16_PACK = 16  # bf16 sublane packing


def _pad_axis(x, axis, multiple):
    size = x.shape[axis]
    pad = (-size) % multiple
    if pad == 0:
        return x
    widths = [(0, 0)] * x.ndim
    widths[axis] = (0, pad)
    return jnp.pad(x, widths)


def _const_index_map(ndim):
    return lambda b: (0,) * ndim


def _vmem_limit_bytes():
    try:
        cap = int(pltpu.get_tpu_info().vmem_capacity_bytes)
    except Exception:
        cap = 64 * 1024 * 1024  # conservative default (v7x per-TC physical VMEM)
    # Leave headroom for Mosaic-internal scratch / semaphores; cap for v5e/v6e.
    return int(min(max(cap - 16 * 1024 * 1024, 32 * 1024 * 1024),
                   112 * 1024 * 1024))


def _single_buffer_supported():
    """Explicit capability check for pipeline_mode=pl.Buffered(1) on weight blocks."""
    try:
        pl.BlockSpec((8, LANE), _const_index_map(2), pipeline_mode=pl.Buffered(1))
        return True
    except (AttributeError, TypeError) as e:
        warnings.warn(
            "pl.Buffered(1) unavailable (%r); constant weight blocks will be "
            "double-buffered (2x weight VMEM)." % (e,))
        return False


def tcn_kernel(src_ref, pos_ref, wtok_ref, btok_ref, we2h_ref, be2h_ref,
               wconv_ref, bconv_ref, who_ref, bho_ref, out_ref, *,
               n_layers, kernel_size, hid_dim, seq_len, b_tile, pad_val):
    f32, bf16 = jnp.float32, jnp.bfloat16
    scale = jnp.float32(math.sqrt(0.5))
    m = b_tile * seq_len          # rows per grid step (fills the MXU M dim)
    hp = hid_dim                  # lane-padded hidden dim

    # --- tok embedding + positional embedding + emb2hid -----------------------
    x = src_ref[...].reshape(m, -1)                            # (M, Dp) bf16
    tok = jnp.dot(x, wtok_ref[...], preferred_element_type=f32) + btok_ref[0]
    # pos is a single resident (L, Ep) block, broadcast over folded sequences.
    emb = (tok.reshape(b_tile, seq_len, -1) + pos_ref[...][None]).reshape(m, -1)
    # dropout == identity (inference)
    h = jnp.dot(emb.astype(bf16), we2h_ref[...],
                preferred_element_type=f32) + be2h_ref[0]      # (M, Hp) f32

    # Loop-invariant causal machinery, hoisted (JAX does not CSE broadcasts).
    row_in_seq = jax.lax.broadcasted_iota(jnp.int32, (m, hp), 0) % seq_len
    pad_const = jnp.full((m, hp), pad_val, f32)
    causal_masks = [row_in_seq < s for s in range(1, kernel_size)]

    # --- causal GLU conv stack --------------------------------------------------
    for layer in range(n_layers):
        # dropout == identity (inference)
        taps = []
        for tap in range(kernel_size):
            shift = kernel_size - 1 - tap
            if shift == 0:
                taps.append(h)
            else:
                rolled = pltpu.roll(h, shift=shift, axis=0)        # XLU slot
                taps.append(jnp.where(causal_masks[shift - 1], pad_const, rolled))
        stacked = taps[0] if kernel_size == 1 else jnp.concatenate(taps, axis=1)
        # Single matmul per layer: contraction K = k*Hp fills the MXU.
        acc = jnp.dot(stacked.astype(bf16), wconv_ref[layer],
                      preferred_element_type=f32) + bconv_ref[layer]   # (M, 2Hp)
        a = acc[:, :hp]                           # GLU value half
        g = acc[:, hp:]                           # GLU gate half
        h = (a * jax.nn.sigmoid(g) + h) * scale   # F.glu + residual + scale

    # --- fused hid2emb @ fc_out (only identity dropout sits between them) -------
    o = jnp.dot(h.astype(bf16), who_ref[...],
                preferred_element_type=f32) + bho_ref[0]               # (M, Op)
    out_ref[...] = o.reshape(b_tile, seq_len, -1).astype(out_ref.dtype)


def tcn_forward(src, params, *, n_layers, kernel_size, trg_pad_idx, b_tile=None):
    """src: (B, L, input_dim) float32. Returns (B, L, output_dim) float32."""
    B, L, D_in = src.shape
    E = params["w_tok"].shape[1]
    H = params["w_e2h"].shape[1]
    O = params["w_out"].shape[1]

    # Matmul weights lane-padded to 128; src channel dim only rounded to the
    # bf16 sublane pack so the per-step src DMA stays small.
    Dp = -(-D_in // BF16_PACK) * BF16_PACK
    Ep = -(-E // LANE) * LANE
    Hp = -(-H // LANE) * LANE
    Op = -(-O // LANE) * LANE

    # Fold sequences so M = b_tile*L ~ 512 rows, but keep grid_b >= 2 when the
    # batch allows it (pipeline overlap; v7x megacore sharding).
    if b_tile is None:
        by_rows = max(1, 512 // max(L, 1))
        half_batch = B // 2 if B >= 2 else 1
        b_tile = max(1, min(B, by_rows, half_batch))
    Bp = -(-B // b_tile) * b_tile
    grid_b = Bp // b_tile

    f32, bf16 = jnp.float32, jnp.bfloat16

    # src: bf16 in HBM, no lane padding.
    src_p = _pad_axis(_pad_axis(src.astype(bf16), 2, BF16_PACK), 0, b_tile)

    # Positional embedding: single resident (L, Ep) block.
    pos = _pad_axis(params["pos_table"][:L].astype(f32), 1, LANE)

    def pad_mat(w):   # (in, out) -> lane-padded bf16 MXU operand
        return _pad_axis(_pad_axis(w, 0, LANE), 1, LANE).astype(bf16)

    def pad_bias(b):  # (1, out) -> (1, out_p) f32
        return _pad_axis(b.astype(f32), 1, LANE)

    w_tok = _pad_axis(_pad_axis(params["w_tok"], 0, BF16_PACK), 1, LANE).astype(bf16)
    b_tok = pad_bias(params["b_tok"])
    w_e2h = pad_mat(params["w_e2h"]); b_e2h = pad_bias(params["b_e2h"])

    # hid2emb and fc_out fused in f32 (reference has only identity dropout between).
    w_ho = params["w_h2e"].astype(f32) @ params["w_out"].astype(f32)
    b_ho = (params["b_h2e"].astype(f32) @ params["w_out"].astype(f32)
            + params["b_out"].astype(f32))
    w_ho = pad_mat(w_ho); b_ho = pad_bias(b_ho)

    # Conv weights (n_layers, k, H, 2H): pad GLU value/gate halves separately so
    # the split at column Hp matches F.glu, then stack the k taps along the
    # contraction dim -> (n_layers, k*Hp, 2Hp) for one matmul per layer.
    wc = params["w_conv"].astype(f32)
    wc_val = _pad_axis(_pad_axis(wc[..., :H], 2, LANE), 3, LANE)
    wc_gate = _pad_axis(_pad_axis(wc[..., H:], 2, LANE), 3, LANE)
    w_conv = jnp.concatenate([wc_val, wc_gate], axis=-1)           # (nl, k, Hp, 2Hp)
    w_conv = w_conv.reshape(n_layers, kernel_size * Hp, 2 * Hp).astype(bf16)
    bc = params["b_conv"].astype(f32)
    b_conv = jnp.concatenate([_pad_axis(bc[:, :H], 1, LANE),
                              _pad_axis(bc[:, H:], 1, LANE)], axis=-1)
    b_conv = b_conv[:, None, :]                                    # (nl, 1, 2Hp)

    kern = functools.partial(
        tcn_kernel, n_layers=n_layers, kernel_size=kernel_size, hid_dim=Hp,
        seq_len=L, b_tile=b_tile, pad_val=float(trg_pad_idx))

    flops = 2 * Bp * L * (Dp * Ep + Ep * Hp
                          + n_layers * (kernel_size * Hp) * (2 * Hp)
                          + Hp * Op)
    transcendentals = Bp * L * Hp * n_layers
    weights = (w_tok, b_tok, w_e2h, b_e2h, w_conv, b_conv, w_ho, b_ho, pos)
    bytes_accessed = (src_p.size * src_p.dtype.itemsize + Bp * L * Op * 4
                      + sum(int(w.size) * w.dtype.itemsize for w in weights))
    cost = pl.CostEstimate(flops=int(flops), transcendentals=int(transcendentals),
                           bytes_accessed=int(bytes_accessed))

    vmem_limit = _vmem_limit_bytes()
    single_ok = _single_buffer_supported()

    def weight_spec(shape, single_buffer):
        if single_buffer:
            return pl.BlockSpec(shape, _const_index_map(len(shape)),
                                pipeline_mode=pl.Buffered(1))
        return pl.BlockSpec(shape, _const_index_map(len(shape)))

    def run(single_buffer):
        def wspec(shape):
            return weight_spec(shape, single_buffer)
        return pl.pallas_call(
            kern,
            out_shape=jax.ShapeDtypeStruct((Bp, L, Op), jnp.float32),
            grid_spec=pltpu.PrefetchScalarGridSpec(
                num_scalar_prefetch=0,
                grid=(grid_b,),
                in_specs=[
                    pl.BlockSpec((b_tile, L, Dp), lambda b: (b, 0, 0)),   # src
                    wspec((L, Ep)),                                       # pos emb
                    wspec((Dp, Ep)), wspec((1, Ep)),                      # tok_embedding
                    wspec((Ep, Hp)), wspec((1, Hp)),                      # emb2hid
                    wspec((n_layers, kernel_size * Hp, 2 * Hp)),          # conv weights
                    wspec((n_layers, 1, 2 * Hp)),                         # conv biases
                    wspec((Hp, Op)), wspec((1, Op)),                      # fused hid2emb@fc_out
                ],
                out_specs=pl.BlockSpec((b_tile, L, Op), lambda b: (b, 0, 0)),
            ),
            compiler_params=pltpu.CompilerParams(
                dimension_semantics=("parallel",),
                vmem_limit_bytes=vmem_limit),
            cost_estimate=cost,
        )(src_p, pos, w_tok, b_tok, w_e2h, b_e2h, w_conv, b_conv, w_ho, b_ho)

    if single_ok:
        try:
            out_p = run(True)
        except Exception as e:
            # Narrow, loud fallback: only Buffered-related lowering rejections.
            msg = repr(e)
            if any(t in msg for t in ("Buffered", "pipeline_mode", "buffer_count")):
                warnings.warn("pipeline_mode=pl.Buffered(1) rejected at lowering "
                              "(%s); retrying with double-buffered weights." % msg)
                out_p = run(False)
            else:
                raise
    else:
        out_p = run(False)

    return out_p[:B, :, :O]


def tcn_reference(src, params, *, n_layers, kernel_size, trg_pad_idx):
    """Pure-JAX f32 reference mirroring the PyTorch forward (eval semantics)."""
    B, L, _ = src.shape
    scale = jnp.float32(math.sqrt(0.5))
    tok = src @ params["w_tok"] + params["b_tok"]
    emb = tok + params["pos_table"][:L][None]
    h = emb @ params["w_e2h"] + params["b_e2h"]                   # (B, L, H)
    H = h.shape[-1]
    for layer in range(n_layers):
        pad = jnp.full((B, kernel_size - 1, H), float(trg_pad_idx), h.dtype)
        padded = jnp.concatenate([pad, h], axis=1)                # (B, L+k-1, H)
        acc = jnp.zeros((B, L, 2 * H), jnp.float32)
        for tap in range(kernel_size):
            acc = acc + padded[:, tap:tap + L, :] @ params["w_conv"][layer, tap]
        acc = acc + params["b_conv"][layer]
        a, g = acc[..., :H], acc[..., H:]
        h = (a * jax.nn.sigmoid(g) + h) * scale
    e = h @ params["w_h2e"] + params["b_h2e"]
    return e @ params["w_out"] + params["b_out"]


def init_params(key, *, input_dim, output_dim, emb_dim, hid_dim,
                n_layers, kernel_size, max_length):
    ks = jax.random.split(key, 12)
    s = 0.02
    return {
        # Linear layers stored as (in, out) so forward is x @ W + b.
        "w_tok": s * jax.random.normal(ks[0], (input_dim, emb_dim), jnp.float32),
        "b_tok": s * jax.random.normal(ks[1], (1, emb_dim), jnp.float32),
        "pos_table": s * jax.random.normal(ks[2], (max_length, emb_dim), jnp.float32),
        "w_e2h": s * jax.random.normal(ks[3], (emb_dim, hid_dim), jnp.float32),
        "b_e2h": s * jax.random.normal(ks[4], (1, hid_dim), jnp.float32),
        # Conv1d weights: PyTorch (2H, H, k) -> stored (n_layers, k, H, 2H);
        # out-channel order [value | gate] matches F.glu(dim=1).
        "w_conv": s * jax.random.normal(
            ks[5], (n_layers, kernel_size, hid_dim, 2 * hid_dim), jnp.float32),
        "b_conv": s * jax.random.normal(ks[6], (n_layers, 2 * hid_dim), jnp.float32),
        "w_h2e": s * jax.random.normal(ks[7], (hid_dim, emb_dim), jnp.float32),
        "b_h2e": s * jax.random.normal(ks[8], (1, emb_dim), jnp.float32),
        "w_out": s * jax.random.normal(ks[9], (emb_dim, output_dim), jnp.float32),
        "b_out": s * jax.random.normal(ks[10], (1, output_dim), jnp.float32),
    }


if __name__ == "__main__":
    # Small shapes consistent with the module's forward.
    B, L = 2, 16
    input_dim, output_dim = 8, 8
    emb_dim, hid_dim = 32, 32
    n_layers, kernel_size = 2, 3
    trg_pad_idx = 0
    max_length = 100

    key = jax.random.PRNGKey(0)
    k_src, k_par = jax.random.split(key)
    src = jax.random.normal(k_src, (B, L, input_dim), jnp.float32)
    params = init_params(k_par, input_dim=input_dim, output_dim=output_dim,
                         emb_dim=emb_dim, hid_dim=hid_dim, n_layers=n_layers,
                         kernel_size=kernel_size, max_length=max_length)

    out = tcn_forward(src, params, n_layers=n_layers, kernel_size=kernel_size,
                      trg_pad_idx=trg_pad_idx)
    out = jax.block_until_ready(out)
    assert out.shape == (B, L, output_dim), out.shape
    assert bool(jnp.all(jnp.isfinite(out)))

    # Pure-JAX f32 reference check (loose tolerance: weights/matmuls run in bf16).
    ref = tcn_reference(src, params, n_layers=n_layers, kernel_size=kernel_size,
                        trg_pad_idx=trg_pad_idx)
    err = float(jnp.max(jnp.abs(out - ref)))
    assert err < 1e-2, f"max abs err vs reference too large: {err}"
    print("KERNEL_OK")
</pallas_src>

<mosaic_0001>
module attributes {stable_mosaic.version = 11 : i64} {
  func.func @tcn_kernel(%arg0: i32, %arg1: memref<1x16x16xbf16, #tpu.memory_space<vmem>>, %arg2: memref<16x128xf32, #tpu.memory_space<vmem>>, %arg3: memref<16x128xbf16, #tpu.memory_space<vmem>>, %arg4: memref<1x128xf32, #tpu.memory_space<vmem>>, %arg5: memref<128x128xbf16, #tpu.memory_space<vmem>>, %arg6: memref<1x128xf32, #tpu.memory_space<vmem>>, %arg7: memref<2x384x256xbf16, #tpu.memory_space<vmem>>, %arg8: memref<2x1x256xf32, #tpu.memory_space<vmem>>, %arg9: memref<128x128xbf16, #tpu.memory_space<vmem>>, %arg10: memref<1x128xf32, #tpu.memory_space<vmem>>, %arg11: memref<1x16x128xf32, #tpu.memory_space<vmem>>) attributes {dimension_semantics = [#tpu.dimension_semantics<parallel>], iteration_bounds = array<i64: 2>, scalar_prefetch = 0 : i64, scratch_operands = 0 : i64, tpu.core_type = #tpu.core_type<tc>, window_params = [{transform_indices = @transform_0, window_bounds = array<i64: 1, 16, 16>}, {pipeline_mode = #tpu.pipeline_mode<synchronous>, transform_indices = @transform_1, window_bounds = array<i64: 16, 128>}, {pipeline_mode = #tpu.pipeline_mode<synchronous>, transform_indices = @transform_2, window_bounds = array<i64: 16, 128>}, {pipeline_mode = #tpu.pipeline_mode<synchronous>, transform_indices = @transform_3, window_bounds = array<i64: 1, 128>}, {pipeline_mode = #tpu.pipeline_mode<synchronous>, transform_indices = @transform_4, window_bounds = array<i64: 128, 128>}, {pipeline_mode = #tpu.pipeline_mode<synchronous>, transform_indices = @transform_5, window_bounds = array<i64: 1, 128>}, {pipeline_mode = #tpu.pipeline_mode<synchronous>, transform_indices = @transform_6, window_bounds = array<i64: 2, 384, 256>}, {pipeline_mode = #tpu.pipeline_mode<synchronous>, transform_indices = @transform_7, window_bounds = array<i64: 2, 1, 256>}, {pipeline_mode = #tpu.pipeline_mode<synchronous>, transform_indices = @transform_8, window_bounds = array<i64: 128, 128>}, {pipeline_mode = #tpu.pipeline_mode<synchronous>, transform_indices = @transform_9, window_bounds = array<i64: 1, 128>}, {transform_indices = @transform_10, window_bounds = array<i64: 1, 16, 128>}]} {
    %c0 = arith.constant 0 : index
    %c0_0 = arith.constant 0 : index
    %c0_1 = arith.constant 0 : index
    %0 = vector.load %arg1[%c0, %c0_0, %c0_1] : memref<1x16x16xbf16, #tpu.memory_space<vmem>>, vector<1x16x16xbf16>
    %1 = vector.shape_cast %0 : vector<1x16x16xbf16> to vector<16x16xbf16>
    %c0_2 = arith.constant 0 : index
    %c0_3 = arith.constant 0 : index
    %2 = vector.load %arg3[%c0_2, %c0_3] : memref<16x128xbf16, #tpu.memory_space<vmem>>, vector<16x128xbf16>
    %cst = arith.constant dense<0.000000e+00> : vector<16x128xf32>
    %3 = tpu.matmul %1, %2, %cst {dimension_numbers = #tpu.dot_dimension_numbers<[1], [0], [0], [1], [0, 0, 1, 1], [], []>} : vector<16x16xbf16>, vector<16x128xbf16>, vector<16x128xf32> -> vector<16x128xf32>
    %c0_4 = arith.constant 0 : index
    %c0_5 = arith.constant 0 : index
    %4 = vector.load %arg4[%c0_4, %c0_5] : memref<1x128xf32, #tpu.memory_space<vmem>>, vector<1x128xf32>
    %5 = vector.shape_cast %4 : vector<1x128xf32> to vector<128xf32>
    %6 = vector.shape_cast %5 : vector<128xf32> to vector<1x128xf32>
    %7 = vector.broadcast %6 : vector<1x128xf32> to vector<16x128xf32>
    %8 = arith.addf %3, %7 : vector<16x128xf32>
    %9 = vector.shape_cast %8 : vector<16x128xf32> to vector<1x16x128xf32>
    %c0_6 = arith.constant 0 : index
    %c0_7 = arith.constant 0 : index
    %10 = vector.load %arg2[%c0_6, %c0_7] : memref<16x128xf32, #tpu.memory_space<vmem>>, vector<16x128xf32>
    %11 = vector.shape_cast %10 : vector<16x128xf32> to vector<1x16x128xf32>
    %12 = arith.addf %9, %11 : vector<1x16x128xf32>
    %13 = vector.shape_cast %12 : vector<1x16x128xf32> to vector<16x128xf32>
    %14 = arith.truncf %13 : vector<16x128xf32> to vector<16x128xbf16>
    %c0_8 = arith.constant 0 : index
    %c0_9 = arith.constant 0 : index
    %15 = vector.load %arg5[%c0_8, %c0_9] : memref<128x128xbf16, #tpu.memory_space<vmem>>, vector<128x128xbf16>
    %cst_10 = arith.constant dense<0.000000e+00> : vector<16x128xf32>
    %16 = tpu.matmul %14, %15, %cst_10 {dimension_numbers = #tpu.dot_dimension_numbers<[1], [0], [0], [1], [0, 0, 1, 1], [], []>} : vector<16x128xbf16>, vector<128x128xbf16>, vector<16x128xf32> -> vector<16x128xf32>
    %c0_11 = arith.constant 0 : index
    %c0_12 = arith.constant 0 : index
    %17 = vector.load %arg6[%c0_11, %c0_12] : memref<1x128xf32, #tpu.memory_space<vmem>>, vector<1x128xf32>
    %18 = vector.shape_cast %17 : vector<1x128xf32> to vector<128xf32>
    %19 = vector.shape_cast %18 : vector<128xf32> to vector<1x128xf32>
    %20 = vector.broadcast %19 : vector<1x128xf32> to vector<16x128xf32>
    %21 = arith.addf %16, %20 : vector<16x128xf32>
    %22 = tpu.iota {dimensions = array<i32: 0>} : vector<16x128xi32>
    %c16_i32 = arith.constant 16 : i32
    %c0_i32 = arith.constant 0 : i32
    %23 = arith.cmpi eq, %c16_i32, %c0_i32 : i32
    %c1_i32 = arith.constant 1 : i32
    %24 = arith.select %23, %c1_i32, %c16_i32 : i32
    %25 = vector.broadcast %24 : i32 to vector<16x128xi32>
    %26 = arith.remsi %22, %25 : vector<16x128xi32>
    %c0_i32_13 = arith.constant 0 : i32
    %27 = vector.broadcast %c0_i32_13 : i32 to vector<16x128xi32>
    %28 = arith.cmpi ne, %26, %27 : vector<16x128xi32>
    %c0_i32_14 = arith.constant 0 : i32
    %29 = vector.broadcast %c0_i32_14 : i32 to vector<16x128xi32>
    %30 = arith.cmpi slt, %26, %29 : vector<16x128xi32>
    %c0_i32_15 = arith.constant 0 : i32
    %31 = arith.cmpi slt, %24, %c0_i32_15 : i32
    %32 = vector.broadcast %31 : i1 to vector<16x128xi1>
    %33 = vector.broadcast %32 : vector<16x128xi1> to vector<16x128xi1>
    %34 = arith.xori %30, %33 : vector<16x128xi1>
    %35 = arith.andi %34, %28 : vector<16x128xi1>
    %36 = vector.broadcast %24 : i32 to vector<16x128xi32>
    %37 = arith.addi %26, %36 : vector<16x128xi32>
    %38 = arith.select %35, %37, %26 : vector<16x128xi1>, vector<16x128xi32>
    %cst_16 = arith.constant 0.000000e+00 : f32
    %39 = vector.broadcast %cst_16 : f32 to vector<16x128xf32>
    %c1_i32_17 = arith.constant 1 : i32
    %40 = vector.broadcast %c1_i32_17 : i32 to vector<16x128xi32>
    %41 = arith.cmpi slt, %38, %40 : vector<16x128xi32>
    %c2_i32 = arith.constant 2 : i32
    %42 = vector.broadcast %c2_i32 : i32 to vector<16x128xi32>
    %43 = arith.cmpi slt, %38, %42 : vector<16x128xi32>
    %c2_i32_18 = arith.constant 2 : i32
    %44 = tpu.dynamic_rotate %21 by %c2_i32_18 dim 0 : vector<16x128xf32>, i32 -> vector<16x128xf32>
    %45 = arith.select %43, %39, %44 : vector<16x128xi1>, vector<16x128xf32>
    %c1_i32_19 = arith.constant 1 : i32
    %46 = tpu.dynamic_rotate %21 by %c1_i32_19 dim 0 : vector<16x128xf32>, i32 -> vector<16x128xf32>
    %47 = arith.select %41, %39, %46 : vector<16x128xi1>, vector<16x128xf32>
    %48 = tpu.concatenate %45, %47, %21 in 1 : vector<16x128xf32>, vector<16x128xf32>, vector<16x128xf32> -> vector<16x384xf32>
    %49 = arith.truncf %48 : vector<16x384xf32> to vector<16x384xbf16>
    %c0_20 = arith.constant 0 : index
    %c0_21 = arith.constant 0 : index
    %c0_22 = arith.constant 0 : index
    %50 = vector.load %arg7[%c0_20, %c0_21, %c0_22] : memref<2x384x256xbf16, #tpu.memory_space<vmem>>, vector<1x384x256xbf16>
    %51 = vector.shape_cast %50 : vector<1x384x256xbf16> to vector<384x256xbf16>
    %cst_23 = arith.constant dense<0.000000e+00> : vector<16x256xf32>
    %52 = tpu.matmul %49, %51, %cst_23 {dimension_numbers = #tpu.dot_dimension_numbers<[1], [0], [0], [1], [0, 0, 1, 1], [], []>} : vector<16x384xbf16>, vector<384x256xbf16>, vector<16x256xf32> -> vector<16x256xf32>
    %c0_24 = arith.constant 0 : index
    %c0_25 = arith.constant 0 : index
    %c0_26 = arith.constant 0 : index
    %53 = vector.load %arg8[%c0_24, %c0_25, %c0_26] : memref<2x1x256xf32, #tpu.memory_space<vmem>>, vector<1x1x256xf32>
    %54 = vector.shape_cast %53 : vector<1x1x256xf32> to vector<1x256xf32>
    %55 = vector.broadcast %54 : vector<1x256xf32> to vector<16x256xf32>
    %56 = arith.addf %52, %55 : vector<16x256xf32>
    %57 = vector.extract_strided_slice %56 {offsets = [0, 0], sizes = [16, 128], strides = [1, 1]} : vector<16x256xf32> to vector<16x128xf32>
    %58 = vector.extract_strided_slice %56 {offsets = [0, 128], sizes = [16, 128], strides = [1, 1]} : vector<16x256xf32> to vector<16x128xf32>
    %59 = arith.negf %58 : vector<16x128xf32>
    %60 = math.exp %59 : vector<16x128xf32>
    %cst_27 = arith.constant 1.000000e+00 : f32
    %61 = vector.broadcast %cst_27 : f32 to vector<16x128xf32>
    %62 = arith.addf %61, %60 : vector<16x128xf32>
    %63 = arith.divf %61, %62 : vector<16x128xf32>
    %64 = arith.mulf %57, %63 : vector<16x128xf32>
    %65 = arith.addf %64, %21 : vector<16x128xf32>
    %cst_28 = arith.constant 0.707106769 : f32
    %66 = vector.broadcast %cst_28 : f32 to vector<16x128xf32>
    %67 = arith.mulf %65, %66 : vector<16x128xf32>
    %c2_i32_29 = arith.constant 2 : i32
    %68 = tpu.dynamic_rotate %67 by %c2_i32_29 dim 0 : vector<16x128xf32>, i32 -> vector<16x128xf32>
    %69 = arith.select %43, %39, %68 : vector<16x128xi1>, vector<16x128xf32>
    %c1_i32_30 = arith.constant 1 : i32
    %70 = tpu.dynamic_rotate %67 by %c1_i32_30 dim 0 : vector<16x128xf32>, i32 -> vector<16x128xf32>
    %71 = arith.select %41, %39, %70 : vector<16x128xi1>, vector<16x128xf32>
    %72 = tpu.concatenate %69, %71, %67 in 1 : vector<16x128xf32>, vector<16x128xf32>, vector<16x128xf32> -> vector<16x384xf32>
    %73 = arith.truncf %72 : vector<16x384xf32> to vector<16x384xbf16>
    %c1 = arith.constant 1 : index
    %c0_31 = arith.constant 0 : index
    %c0_32 = arith.constant 0 : index
    %74 = vector.load %arg7[%c1, %c0_31, %c0_32] : memref<2x384x256xbf16, #tpu.memory_space<vmem>>, vector<1x384x256xbf16>
    %75 = vector.shape_cast %74 : vector<1x384x256xbf16> to vector<384x256xbf16>
    %cst_33 = arith.constant dense<0.000000e+00> : vector<16x256xf32>
    %76 = tpu.matmul %73, %75, %cst_33 {dimension_numbers = #tpu.dot_dimension_numbers<[1], [0], [0], [1], [0, 0, 1, 1], [], []>} : vector<16x384xbf16>, vector<384x256xbf16>, vector<16x256xf32> -> vector<16x256xf32>
    %c1_34 = arith.constant 1 : index
    %c0_35 = arith.constant 0 : index
    %c0_36 = arith.constant 0 : index
    %77 = vector.load %arg8[%c1_34, %c0_35, %c0_36] : memref<2x1x256xf32, #tpu.memory_space<vmem>>, vector<1x1x256xf32>
    %78 = vector.shape_cast %77 : vector<1x1x256xf32> to vector<1x256xf32>
    %79 = vector.broadcast %78 : vector<1x256xf32> to vector<16x256xf32>
    %80 = arith.addf %76, %79 : vector<16x256xf32>
    %81 = vector.extract_strided_slice %80 {offsets = [0, 0], sizes = [16, 128], strides = [1, 1]} : vector<16x256xf32> to vector<16x128xf32>
    %82 = vector.extract_strided_slice %80 {offsets = [0, 128], sizes = [16, 128], strides = [1, 1]} : vector<16x256xf32> to vector<16x128xf32>
    %83 = arith.negf %82 : vector<16x128xf32>
    %84 = math.exp %83 : vector<16x128xf32>
    %cst_37 = arith.constant 1.000000e+00 : f32
    %85 = vector.broadcast %cst_37 : f32 to vector<16x128xf32>
    %86 = arith.addf %85, %84 : vector<16x128xf32>
    %87 = arith.divf %85, %86 : vector<16x128xf32>
    %88 = arith.mulf %81, %87 : vector<16x128xf32>
    %89 = arith.addf %88, %67 : vector<16x128xf32>
    %cst_38 = arith.constant 0.707106769 : f32
    %90 = vector.broadcast %cst_38 : f32 to vector<16x128xf32>
    %91 = arith.mulf %89, %90 : vector<16x128xf32>
    %92 = arith.truncf %91 : vector<16x128xf32> to vector<16x128xbf16>
    %c0_39 = arith.constant 0 : index
    %c0_40 = arith.constant 0 : index
    %93 = vector.load %arg9[%c0_39, %c0_40] : memref<128x128xbf16, #tpu.memory_space<vmem>>, vector<128x128xbf16>
    %cst_41 = arith.constant dense<0.000000e+00> : vector<16x128xf32>
    %94 = tpu.matmul %92, %93, %cst_41 {dimension_numbers = #tpu.dot_dimension_numbers<[1], [0], [0], [1], [0, 0, 1, 1], [], []>} : vector<16x128xbf16>, vector<128x128xbf16>, vector<16x128xf32> -> vector<16x128xf32>
    %c0_42 = arith.constant 0 : index
    %c0_43 = arith.constant 0 : index
    %95 = vector.load %arg10[%c0_42, %c0_43] : memref<1x128xf32, #tpu.memory_space<vmem>>, vector<1x128xf32>
    %96 = vector.shape_cast %95 : vector<1x128xf32> to vector<128xf32>
    %97 = vector.shape_cast %96 : vector<128xf32> to vector<1x128xf32>
    %98 = vector.broadcast %97 : vector<1x128xf32> to vector<16x128xf32>
    %99 = arith.addf %94, %98 : vector<16x128xf32>
    %100 = vector.shape_cast %99 : vector<16x128xf32> to vector<1x16x128xf32>
    %c0_44 = arith.constant 0 : index
    %c0_45 = arith.constant 0 : index
    %c0_46 = arith.constant 0 : index
    %101 = vector.load %arg11[%c0_44, %c0_45, %c0_46] : memref<1x16x128xf32, #tpu.memory_space<vmem>>, vector<1x16x128xf32>
    tpu.vector_store %arg11[%c0_44, %c0_45, %c0_46], %100 {strides = array<i32>} : memref<1x16x128xf32, #tpu.memory_space<vmem>>, vector<1x16x128xf32>,
    return
  }
  func.func @transform_0(%arg0: i32) -> (i32, i32, i32) {
    %c0_i32 = arith.constant 0 : i32
    %c0_i32_0 = arith.constant 0 : i32
    %c0_i32_1 = arith.constant 0 : i32
    return %arg0, %c0_i32, %c0_i32_0 : i32, i32, i32
  }
  func.func @transform_1(%arg0: i32) -> (i32, i32) {
    %c0_i32 = arith.constant 0 : i32
    %c0_i32_0 = arith.constant 0 : i32
    %c0_i32_1 = arith.constant 0 : i32
    return %c0_i32, %c0_i32_0 : i32, i32
  }
  func.func @transform_2(%arg0: i32) -> (i32, i32) {
    %c0_i32 = arith.constant 0 : i32
    %c0_i32_0 = arith.constant 0 : i32
    %c0_i32_1 = arith.constant 0 : i32
    return %c0_i32, %c0_i32_0 : i32, i32
  }
  func.func @transform_3(%arg0: i32) -> (i32, i32) {
    %c0_i32 = arith.constant 0 : i32
    %c0_i32_0 = arith.constant 0 : i32
    %c0_i32_1 = arith.constant 0 : i32
    return %c0_i32, %c0_i32_0 : i32, i32
  }
  func.func @transform_4(%arg0: i32) -> (i32, i32) {
    %c0_i32 = arith.constant 0 : i32
    %c0_i32_0 = arith.constant 0 : i32
    %c0_i32_1 = arith.constant 0 : i32
    return %c0_i32, %c0_i32_0 : i32, i32
  }
  func.func @transform_5(%arg0: i32) -> (i32, i32) {
    %c0_i32 = arith.constant 0 : i32
    %c0_i32_0 = arith.constant 0 : i32
    %c0_i32_1 = arith.constant 0 : i32
    return %c0_i32, %c0_i32_0 : i32, i32
  }
  func.func @transform_6(%arg0: i32) -> (i32, i32, i32) {
    %c0_i32 = arith.constant 0 : i32
    %c0_i32_0 = arith.constant 0 : i32
    %c0_i32_1 = arith.constant 0 : i32
    %c0_i32_2 = arith.constant 0 : i32
    return %c0_i32, %c0_i32_0, %c0_i32_1 : i32, i32, i32
  }
  func.func @transform_7(%arg0: i32) -> (i32, i32, i32) {
    %c0_i32 = arith.constant 0 : i32
    %c0_i32_0 = arith.constant 0 : i32
    %c0_i32_1 = arith.constant 0 : i32
    %c0_i32_2 = arith.constant 0 : i32
    return %c0_i32, %c0_i32_0, %c0_i32_1 : i32, i32, i32
  }
  func.func @transform_8(%arg0: i32) -> (i32, i32) {
    %c0_i32 = arith.constant 0 : i32
    %c0_i32_0 = arith.constant 0 : i32
    %c0_i32_1 = arith.constant 0 : i32
    return %c0_i32, %c0_i32_0 : i32, i32
  }
  func.func @transform_9(%arg0: i32) -> (i32, i32) {
    %c0_i32 = arith.constant 0 : i32
    %c0_i32_0 = arith.constant 0 : i32
    %c0_i32_1 = arith.constant 0 : i32
    return %c0_i32, %c0_i32_0 : i32, i32
  }
  func.func @transform_10(%arg0: i32) -> (i32, i32, i32) {
    %c0_i32 = arith.constant 0 : i32
    %c0_i32_0 = arith.constant 0 : i32
    %c0_i32_1 = arith.constant 0 : i32
    return %arg0, %c0_i32, %c0_i32_0 : i32, i32, i32
  }
}

</mosaic_0001>

<bundles_post_ra>
// kernel: tpu_custom_call.1
= control target key start
LH: loop header
LB: loop body
LE: loop exit
PB: predicated region body
PF: predicated region fallthrough
CT: control target
= control target key end

     0   :  { %s3100_s0 = inlined_call_operand.hbm [shape: bf16[2,16,16], index: 0, kind: input, shape index: {}]   ;;  %s3101_s1 = inlined_call_operand.hbm [shape: f32[16,128], index: 1, kind: input, shape index: {}]   ;;  %s3102_s2 = inlined_call_operand.hbm [shape: bf16[16,128], index: 2, kind: input, shape index: {}]   ;;  %s3103_s3 = inlined_call_operand.vmem [shape: f32[1,128], index: 3, kind: input, shape index: {}]   ;;  %s3104_s4 = inlined_call_operand.hbm [shape: bf16[128,128], index: 4, kind: input, shape index: {}]   ;;  %s3105_s5 = inlined_call_operand.vmem [shape: f32[1,128], index: 5, kind: input, shape index: {}]   ;;  %s3106_s6 = inlined_call_operand.hbm [shape: bf16[2,384,256], index: 6, kind: input, shape index: {}]   ;;  %s3107_s7 = inlined_call_operand.vmem [shape: f32[2,1,256], index: 7, kind: input, shape index: {}]   ;;  %s3108_s8 = inlined_call_operand.hbm [shape: bf16[128,128], index: 8, kind: input, shape index: {}]   ;;  %s3109_s9 = inlined_call_operand.vmem [shape: f32[1,128], index: 9, kind: input, shape index: {}]   ;;  %s3110_s10 = inlined_call_operand.hbm [shape: f32[2,16,128], index: 10, kind: output, shape index: {}]  }
   0x1   :  { %3113 = sst [smem:[#allocation19_spill]] %s3101_s1 }
   0x2   :  { %3114 = sst [smem:[#allocation20_spill]] %s3102_s2 }
   0x3   :  { %3115 = sst [smem:[#allocation21_spill]] %s3104_s4 }
   0x4   :  { %3116 = sst [smem:[#allocation22_spill]] %s3106_s6 }
   0x5   :  { %15 = vsyncpa [#allocation3], 0 }
   0x6   :  { %17 = vsyncpa [#allocation3 + $0x1], 0 }
   0x7   :  { %18 = vsyncpa [#allocation6], 0 }
   0x8   :  { %19 = vsyncpa [#allocation9], 0 }
   0x9   :  { %20 = vsyncpa [#allocation12], 0 }
   0xa   :  { %21 = vsyncpa [#allocation4], 0 }
   0xb   :  { %23 = vsyncpa [#allocation4 + $0x1], 0  ;;  %s2805_s13 = smov 0   ;;  %s2807_s14 = smov 0  }
   0xc   :  { %s2809_s15 = smov 0   ;;  %s2811_s16 = smov 0  }
   0xd LB: > { %s3117_s1 = sld [smem:[#allocation19_spill]]  ;;  %s2829_s20 = sadd.s32 4294967295, %s2736_s16   ;;  %s2736_s16 = sphi %s2811_s16, %s3137_s16   ;;  %s2732_s15 = sphi %s2809_s15, %s3136_s15   ;;  %s2728_s14 = sphi %s2807_s14, %s3135_s14   ;;  %s2724_s13 = sphi %s2805_s13, %s3134_s13  }
   0xe   : > { %p1720_p0 = scmp.ge.s32.totalorder %s2736_s16, 1  ;;  %p50_p1 = scmp.eq.s32.totalorder %s2829_s20, 0 }
   0xf   : > { %p275_p2 = scmp.lt.s32.totalorder %s2736_s16, 3  ;;  %s2738_s22 = smov [#allocation5]  }
  0x10   : > { %s288_s23 = sshll.u32 %s2738_s22, 4  ;;  %s3120_s4 = sld [smem:[#allocation21_spill]]  ;;  %s289_s23 = int_to_ptr.vmem [resolvable:$true] %s288_s23 }
  0x11   : > { %p2834_p3 = pnand %p1720_p0, %p275_p2  ;;  %s2739_s28 = smov 128  }
  0x12   : > { %s2740_s29 = smov 8   ;;  %s2741_s30 = smov [#allocation8]  }
  0x13   : > { %s286_s19 = sshll.u32 %s3117_s1, 4  ;;  %p2379_p4 = pneg %p2834_p3  ;;  %s287_s19 = int_to_ptr.hbm [resolvable:$true] %s286_s19 }
  0x14   : > { %s319_s11 = sshll.u32 %s2741_s30, 4  ;;  %s3121_s2 = sld [smem:[#allocation20_spill]]  ;;  %s320_s11 = int_to_ptr.vmem [resolvable:$true] %s319_s11 }
  0x15   : > { %p2843_p6 = pnand %p2379_p4, %p50_p1  ;;  %s3111_s22 = smov 64  }
  0x16   : > { %s317_s27 = sshll.u32 %s3120_s4, 4  ;;  %s3112_s25 = smov 4   ;;  %s318_s27 = int_to_ptr.hbm [resolvable:$true] %s317_s27 }
  0x17   : > { %2382 = dma.hbm_to_vmem [thread:$0]  (!%p2843_p6), %s287_s19, 256, %s289_s23, [#allocation6], %s2739_s28, %s2739_s28, %s2740_s29  }
  0x18   : > { %2388 = dma.hbm_to_vmem [thread:$0]  (!%p2843_p6), %s318_s27, 1024, %s320_s11, [#allocation9], %s3111_s22, %s3111_s22, %s3112_s25  }
  0x19   : > { %s3122_s6 = sld [smem:[#allocation22_spill]]  ;;  %s2744_s23 = smov [#allocation7]  }
  0x1a   : > { %s300_s18 = sshll.u32 %s3121_s2, 4  ;;  %s302_s30 = sshll.u32 %s2744_s23, 4  ;;  %s301_s18 = int_to_ptr.hbm [resolvable:$true] %s300_s18  ;;  %s303_s30 = int_to_ptr.vmem [resolvable:$true] %s302_s30 }
  0x1b   : > { %2385 = dma.hbm_to_vmem [thread:$0]  (!%p2843_p6), %s301_s18, 128, %s303_s30, [#allocation6], %s3111_s22, %s3111_s22, %s3112_s25  }
  0x1c   : > { %s2745_s27 = smov [#allocation10]   ;;  %s351_s17 = sshll.u32 %s3108_s8, 4  ;;  %s352_s17 = int_to_ptr.hbm [resolvable:$true] %s351_s17 }
  0x1d   : > { %s336_s1 = sshll.u32 %s2745_s27, 4  ;;  %s2746_s26 = smov [#allocation11]   ;;  %s337_s1 = int_to_ptr.vmem [resolvable:$true] %s336_s1 }
  0x1e   : > { %s353_s23 = sshll.u32 %s2746_s26, 4  ;;  %s1719_s18 = sadd.s32 4294967294, %s2736_s16   ;;  %s354_s23 = int_to_ptr.vmem [resolvable:$true] %s353_s23 }
  0x1f   : > { %s334_s19 = sshll.u32 %s3122_s6, 4  ;;  %s2880_s30 = sadd.s32 1, %s2736_s16   ;;  %s335_s19 = int_to_ptr.hbm [resolvable:$true] %s334_s19 }
  0x20   : > { %2391 = dma.hbm_to_vmem [thread:$0]  (!%p2843_p6), %s335_s19, 12288, %s337_s1, [#allocation9], %s2739_s28, %s2739_s28, %s2740_s29  }
  0x21   : > { %2394 = dma.hbm_to_vmem [thread:$0]  (!%p2843_p6), %s352_s17, 1024, %s354_s23, [#allocation12], %s3111_s22, %s3111_s22, %s3112_s25  }
  0x22   : > { %s36_s27 = sadd.s32 1, %s2732_s15  ;;  %s33_s11 = ssub.s32 %s2736_s16, %s2880_s30 }
  0x23   : > { %p43_p7 = scmp.ne.s32.totalorder %s2732_s15, %s2728_s14  ;;  %p34_p8 = scmp.eq.s32.totalorder %s33_s11, 0 }
  0x24   : > { %p44_p9 = scmp.eq.s32.totalorder %s2736_s16, 0  ;;  %p49_p10 = scmp.ne.s32.totalorder %s2728_s14, %s2724_s13 }
  0x25   : > { %p262_p11 = scmp.eq.s32.totalorder %s2829_s20, 1  ;;  %p268_p0 = scmp.eq.s32.totalorder %s1719_s18, 1 }
  0x26   : > { %s2892_s28 = scalar_select %p34_p8, %s2732_s15, %s36_s27  }
  0x27   : > { %p2896_p12 = por %p50_p1, %p49_p10  ;;  %p2900_p13 = por %p262_p11, %p43_p7 }
  0x28   : > { %p45_p2 = por %p44_p9, %p43_p7  ;;  %s370_s19 = sand.u32 1, %s2732_s15  }
  0x29   : > { %p2905_p4 = por %p268_p0, %p49_p10  ;;  %p2408_p6 = scmp.lt.s32.totalorder %s2736_s16, 2 }
  0x2a   : > { %s1727_s12 = sshll.u32 %s370_s19, 3  ;;  %s2237_s17 = sshll.u32 %s2736_s16, 3 }
  0x2b   : > { %s379_s27 = scalar_lea.hbm %s3100_s0, %s2237_s17  ;;  %s374_s22 = scalar_lea.vmem [#allocation2], %s1727_s12 }
  0x2c   : > { %s380_s11 = sshll.u32 %s379_s27, 4  ;;  %s382_s25 = sshll.u32 %s374_s22, 4  ;;  %s381_s11 = int_to_ptr.hbm [resolvable:$true] %s380_s11  ;;  %s383_s25 = int_to_ptr.vmem [resolvable:$true] %s382_s25 }
  0x2d   : > { %p2914_p8 = pnand %p2408_p6, %p45_p2  ;;  %s371_s2 = scalar_lea.sflag [#allocation3], %s370_s19 }
  0x2e   : > { %s2628_s4 = sshra.s32 %s381_s11, 4  ;;  %s2635_s22 = scalar_lea.hbm %s3100_s0, 16  ;;  %s2629_s4 = int_to_ptr.hbm [resolvable:$true] %s2628_s4 }
  0x2f   : > { %s2630_s6 = scalar_lea.hbm %s2629_s4, 8  ;;  %p2632_p9 = pneg %p2914_p8 }
  0x30   : > { %p2631_p7 = scmp.ne.s32.totalorder %s2629_s4, %s2630_s6  ;;  %p2636_p0 = scmp.lt.s32.totalorder %s2629_s4, %s3100_s0 }
  0x31   : > { %p2637_p2 = scmp.lt.s32.totalorder %s2635_s22, %s2630_s6 }
  0x32   : > { %p2633_p10 = pnand %p2632_p9, %p2631_p7 }
  0x33   : > { %p2638_p6 = por %p2637_p2, %p2636_p0 }
  0x34   : > { %p2634_p11 = pneg %p2633_p10 }
  0x36   : > { %p2639_p5 = pnand %p2638_p6, %p2634_p11 }
  0x38   : > { %2642 = shalt.err (!%p2639_p5)
}
  0x39   : > { %s3127_s19 = smov 4   ;;  %s3128_s27 = smov 64  }
  0x3a   : > { %2398 = dma.hbm_to_vmem [thread:$0]  (!%p2914_p8), %s381_s11, 128, %s383_s25, %s371_s2, %s3128_s27, %s3128_s27, %s3127_s19  }
  0x3b   : > { %394 = sbr.rel (%p2834_p3) target bundleno = 891 (0x37b), region = 60  ;;  %s2934_s17 = sand.u32 (!%p2834_p3), 1, %s2728_s14  }
  0x3c   : > { %s1731_s4 = sshll.u32 (!%p2834_p3), %s2934_s17, 3  ;;  %s397_s6 = scalar_lea.sflag (!%p2834_p3), [#allocation3], %s2934_s17 }
  0x3d   : > { %s400_s26 = scalar_lea.vmem (!%p2834_p3), [#allocation2], %s1731_s4 }
  0x40   : > { %2703 = dma.done.wait (%p2896_p12), %s397_s6, 128  }
  0x41   : > { %2705 = vsyncadd (%p2896_p12), %s397_s6, 4294967168 }
  0x42   : > { %2707 = dma.done.wait (%p50_p1), [#allocation6], 384  }
  0x43   : > { %2709 = vsyncadd (%p50_p1), [#allocation6], 4294966912 }
  0x44   : > { %2711 = dma.done.wait (%p50_p1), [#allocation9], 13312  }
  0x45   : > { %2713 = vsyncadd (%p50_p1), [#allocation9], 4294953984 }
  0x46   : > { %2715 = dma.done.wait (%p50_p1), [#allocation12], 1024  }
  0x47   : > { %2717 = vsyncadd (%p50_p1), [#allocation12], 4294966272  ;;  %v2239_v0 = vld [vmem:[#allocation7] sm:$0xff]  ;;  %vm483_vm0 = vcmask 130048   ;;  %v2246_v3 = vld [vmem:[#allocation8 + $0x30] sm:$0xff]  ;;  %vm2747_vm5 = vmmov 1  }
  0x48   : > { %v2247_v1 = vld [vmem:[#allocation8 + $0x38] sm:$0xff]  ;;  %494 = vmatpush.bf16.msra.mxu0 %v2239_v0  ;;  %v2245_v4 = vld [vmem:[#allocation8 + $0x28] sm:$0xff]  ;;  %v2244_v5 = vld [vmem:[#allocation8 + $0x20] sm:$0xff]  ;;  %s1737_s23 = sshll.u32 %s2934_s17, 4  ;;  %s2352_s4 = sshll.u32 %s2829_s20, 4 }
  0x49   : > { %v2238_v2 = vld [vmem:[%s400_s26] sm:$0xff]  ;;  %574 = vmatpush.bf16.msra.mxu1 %v2247_v1  ;;  %v2242_v7 = vld [vmem:[#allocation8 + $0x10] sm:$0xff]  ;;  %v2241_v8 = vld [vmem:[#allocation8 + $0x8] sm:$0xff]  ;;  %s1594_s2 = scalar_lea.hbm %s3110_s10, %s2352_s4  ;;  %s462_s21 = scalar_lea.vmem [#allocation13], %s1737_s23 }
  0x4a   : > { %v2243_v6 = vld [vmem:[#allocation8 + $0x18] sm:$0xff]  ;;  %v2240_v9 = vld [vmem:[#allocation8] sm:$0xff]  ;;  %v1837_v10 = vld [vmem:[#allocation10 + $0x70] sm:$0xf]  ;;  %s1595_s25 = sshll.u32 %s462_s21, 4  ;;  %s1597_s24 = sshll.u32 %s1594_s2, 4  ;;  %s1596_s25 = int_to_ptr.vmem [resolvable:$true] %s1595_s25  ;;  %s1598_s24 = int_to_ptr.hbm [resolvable:$true] %s1597_s24 }
  0x4b   : > { %1746 = vmatmul.msk.bf16.vlgmr.msra.gmra.mxu0 %vm483_vm0, %v2238_v2  ;;  %v2263_v11 = vld [vmem:[#allocation10 + $0x74] sm:$0xf0]  ;;  %v1901_v12 = vld [vmem:[#allocation10 + $0xf0] sm:$0xf]  ;;  %v1829_v15 = vld [vmem:[#allocation10 + $0x60] sm:$0xf] }
  0x4c   : > { %v1838_v13 = vor.u32 %v2263_v11, %v1837_v10  ;;  %v2279_v14 = vld [vmem:[#allocation10 + $0xf4] sm:$0xf0]  ;;  %v2261_v16 = vld [vmem:[#allocation10 + $0x64] sm:$0xf0]  ;;  %v1893_v18 = vld [vmem:[#allocation10 + $0xe0] sm:$0xf] }
  0x4d   : > { %575 = vmatpush.bf16.msra.mxu1 %v2246_v3  ;;  %v1902_v17 = vor.u32 %v2279_v14, %v1901_v12  ;;  %v2277_v19 = vld [vmem:[#allocation10 + $0xe4] sm:$0xf0]  ;;  %v1830_v20 = vor.u32 %v2261_v16, %v1829_v15  ;;  %v1821_v21 = vld [vmem:[#allocation10 + $0x50] sm:$0xf]  ;;  %v2259_v23 = vld [vmem:[#allocation10 + $0x54] sm:$0xf0] }
  0x4e   : > { %930 = vmatpush.bf16.msra.mxu2 %v1838_v13  ;;  %v1894_v22 = vor.u32 %v2277_v19, %v1893_v18  ;;  %v1965_v24 = vld [vmem:[#allocation10 + $0x170] sm:$0xf]  ;;  %v2295_v25 = vld [vmem:[#allocation10 + $0x174] sm:$0xf0]  ;;  %v2262_v29 = vld [vmem:[#allocation10 + $0x74] sm:$0xf]  ;;  %v1822_v32 = vor.u32 %v2259_v23, %v1821_v21 }
  0x4f   : > { %944 = vmatpush.bf16.msra.mxu3 %v1902_v17  ;;  %v1885_v26 = vld [vmem:[#allocation10 + $0xd0] sm:$0xf]  ;;  %v2275_v27 = vld [vmem:[#allocation10 + $0xd4] sm:$0xf0]  ;;  %v1966_v28 = vor.u32 %v2295_v25, %v1965_v24  ;;  %v1839_v30 = vld [vmem:[#allocation10 + $0x78] sm:$0xf0] }
  0x50   : > { %v1957_v31 = vld [vmem:[#allocation10 + $0x160] sm:$0xf]  ;;  %v2257_v34 = vld [vmem:[#allocation10 + $0x44] sm:$0xf0]  ;;  %v1842_v35 = vor.u32 %v2262_v29, %v1839_v30  ;;  %v1886_v37 = vor.u32 %v2275_v27, %v1885_v26  ;;  %v2260_v41 = vld [vmem:[#allocation10 + $0x64] sm:$0xf] }
  0x51   : > { %576 = vmatpush.bf16.msra.mxu1 %v2245_v4  ;;  %958 = vmatpush.bf16.msrb.mxu0 %v1966_v28  ;;  %v1813_v33 = vld [vmem:[#allocation10 + $0x40] sm:$0xf]  ;;  %v2293_v36 = vld [vmem:[#allocation10 + $0x164] sm:$0xf0]  ;;  %v1831_v42 = vld [vmem:[#allocation10 + $0x68] sm:$0xf0] }
  0x52   : > { %931 = vmatpush.bf16.msra.mxu2 %v1830_v20  ;;  %v1877_v38 = vld [vmem:[#allocation10 + $0xc0] sm:$0xf]  ;;  %v2273_v39 = vld [vmem:[#allocation10 + $0xc4] sm:$0xf0]  ;;  %v1958_v40 = vor.u32 %v2293_v36, %v1957_v31  ;;  %v1949_v43 = vld [vmem:[#allocation10 + $0x150] sm:$0xf]  ;;  %v1834_v45 = vor.u32 %v2260_v41, %v1831_v42  ;;  %v1814_v46 = vor.u32 %v2257_v34, %v1813_v33 }
  0x53   : > { %945 = vmatpush.bf16.msra.mxu3 %v1894_v22  ;;  %v2291_v44 = vld [vmem:[#allocation10 + $0x154] sm:$0xf0]  ;;  %v1805_v47 = vld [vmem:[#allocation10 + $0x30] sm:$0xf]  ;;  %v2258_v49 = vld [vmem:[#allocation10 + $0x54] sm:$0xf]  ;;  %v1878_v51 = vor.u32 %v2273_v39, %v1877_v38 }
  0x54   : > { %v1950_v48 = vor.u32 %v2291_v44, %v1949_v43  ;;  %v1823_v50 = vld [vmem:[#allocation10 + $0x58] sm:$0xf0]  ;;  %v2255_v52 = vld [vmem:[#allocation10 + $0x34] sm:$0xf0]  ;;  %v1941_v53 = vld [vmem:[#allocation10 + $0x140] sm:$0xf] }
  0x55   : > { %577 = vmatpush.bf16.msra.mxu1 %v2244_v5  ;;  %959 = vmatpush.bf16.msrb.mxu0 %v1958_v40  ;;  %v2289_v54 = vld [vmem:[#allocation10 + $0x144] sm:$0xf0]  ;;  %v1869_v55 = vld [vmem:[#allocation10 + $0xb0] sm:$0xf]  ;;  %v2271_v56 = vld [vmem:[#allocation10 + $0xb4] sm:$0xf0]  ;;  %v1826_v57 = vor.u32 %v2258_v49, %v1823_v50  ;;  %v1806_v60 = vor.u32 %v2255_v52, %v1805_v47 }
  0x56   : > { %932 = vmatpush.bf16.msra.mxu2 %v1822_v32  ;;  %v2256_v58 = vld [vmem:[#allocation10 + $0x44] sm:$0xf]  ;;  %v1815_v59 = vld [vmem:[#allocation10 + $0x48] sm:$0xf0]  ;;  %v1797_v61 = vld [vmem:[#allocation10 + $0x20] sm:$0xf]  ;;  %v1942_v62 = vor.u32 %v2289_v54, %v1941_v53  ;;  %v1870_v63 = vor.u32 %v2271_v56, %v1869_v55 }
  0x57   : > { %946 = vmatpush.bf16.msra.mxu3 %v1886_v37  ;;  %v2253_v0 = vld [vmem:[#allocation10 + $0x24] sm:$0xf0]  ;;  %v1933_v1 = vld [vmem:[#allocation10 + $0x130] sm:$0xf]  ;;  %v2287_v2 = vld [vmem:[#allocation10 + $0x134] sm:$0xf0] }
  0x58   : > { %v1861_v4 = vld [vmem:[#allocation10 + $0xa0] sm:$0xf]  ;;  %v2269_v5 = vld [vmem:[#allocation10 + $0xa4] sm:$0xf0]  ;;  %v1789_v11 = vld [vmem:[#allocation10 + $0x10] sm:$0xf] }
  0x59   : > { %578 = vmatpush.bf16.msra.mxu1 %v2243_v6  ;;  %960 = vmatpush.bf16.msrb.mxu0 %v1950_v48  ;;  %v1818_v6 = vor.u32 %v2256_v58, %v1815_v59  ;;  %v1862_v10 = vor.u32 %v2269_v5, %v1861_v4  ;;  %v2251_v12 = vld [vmem:[#allocation10 + $0x14] sm:$0xf0]  ;;  %v1853_v13 = vld [vmem:[#allocation10 + $0x90] sm:$0xf]  ;;  %v501_v18 = vld [vmem:[#allocation5] sm:$0xff]  ;;  %s1583_s11 = scalar_lea.sflag [#allocation4], %s2934_s17 }
  0x5a   : > { %933 = vmatpush.bf16.msra.mxu2 %v1814_v46  ;;  %v2267_v14 = vld [vmem:[#allocation10 + $0x94] sm:$0xf0]  ;;  %v1790_v15 = vor.u32 %v2251_v12, %v1789_v11  ;;  %v502_v20 = vld [vmem:[#allocation5 + $0x8] sm:$0xff]  ;;  %v1781_v25 = vld [vmem:[#allocation10] sm:$0xf]  ;;  %s2672_s18 = sshra.s32 %s1598_s24, 4  ;;  %s2673_s18 = int_to_ptr.hbm [resolvable:$true] %s2672_s18 }
  0x5b   : > { %947 = vmatpush.bf16.msra.mxu3 %v1878_v51  ;;  %v1854_v17 = vor.u32 %v2267_v14, %v1853_v13  ;;  %v2249_v26 = vld [vmem:[#allocation10 + $0x4] sm:$0xf0]  ;;  %v1845_v27 = vld [vmem:[#allocation10 + $0x80] sm:$0xf]  ;;  %v2254_v30 = vld [vmem:[#allocation10 + $0x34] sm:$0xf]  ;;  %p2679_p12 = scmp.lt.s32.totalorder %s2673_s18, %s3110_s10 }
  0x5c   : > { %v1782_v28 = vor.u32 %v2249_v26, %v1781_v25  ;;  %v2265_v29 = vld [vmem:[#allocation10 + $0x84] sm:$0xf0]  ;;  %v1807_v31 = vld [vmem:[#allocation10 + $0x38] sm:$0xf0]  ;;  %v2278_v34 = vld [vmem:[#allocation10 + $0xf4] sm:$0xf] }
  0x5d   : > { %579 = vmatpush.bf16.msra.mxu1 %v2242_v7  ;;  %v1798_v7 = vor.u32 %v2253_v0, %v1797_v61  ;;  %961 = vmatpush.bf16.msrb.mxu0 %v1942_v62  ;;  %v1846_v32 = vor.u32 %v2265_v29, %v1845_v27  ;;  %v1810_v33 = vor.u32 %v2254_v30, %v1807_v31  ;;  %v2294_v36 = vld [vmem:[#allocation10 + $0x174] sm:$0xf]  ;;  %v1967_v38 = vld [vmem:[#allocation10 + $0x178] sm:$0xf0]  ;;  %v1925_v39 = vld [vmem:[#allocation10 + $0x120] sm:$0xf] }
  0x5e   : > { %934 = vmatpush.bf16.msra.mxu2 %v1806_v60  ;;  %v2285_v40 = vld [vmem:[#allocation10 + $0x124] sm:$0xf0]  ;;  %v1970_v41 = vor.u32 %v2294_v36, %v1967_v38  ;;  %v2252_v43 = vld [vmem:[#allocation10 + $0x24] sm:$0xf]  ;;  %v1799_v44 = vld [vmem:[#allocation10 + $0x28] sm:$0xf0]  ;;  %v588_v36 = vlaneseq }
  0x5f   : > { %948 = vmatpush.bf16.msra.mxu3 %v1870_v63  ;;  %v1926_v42 = vor.u32 %v2285_v40, %v1925_v39  ;;  %v1802_v46 = vor.u32 %v2252_v43, %v1799_v44  ;;  %v1895_v47 = vld [vmem:[#allocation10 + $0xe8] sm:$0xf0]  ;;  %v2292_v48 = vld [vmem:[#allocation10 + $0x164] sm:$0xf]  ;;  %v1917_v52 = vld [vmem:[#allocation10 + $0x110] sm:$0xf] }
  0x60   : > { %v1959_v49 = vld [vmem:[#allocation10 + $0x168] sm:$0xf0]  ;;  %v2283_v53 = vld [vmem:[#allocation10 + $0x114] sm:$0xf0]  ;;  %v2250_v55 = vld [vmem:[#allocation10 + $0x14] sm:$0xf] }
  0x61   : > { %580 = vmatpush.bf16.msra.mxu1 %v2241_v8  ;;  %v1934_v8 = vor.u32 %v2287_v2, %v1933_v1  ;;  %v1962_v51 = vor.u32 %v2292_v48, %v1959_v49  ;;  %v1918_v54 = vor.u32 %v2283_v53, %v1917_v52  ;;  %v1791_v56 = vld [vmem:[#allocation10 + $0x18] sm:$0xf0]  ;;  %v2290_v60 = vld [vmem:[#allocation10 + $0x154] sm:$0xf]  ;;  %v1909_v0 = vld [vmem:[#allocation10 + $0x100] sm:$0xf] }
  0x62   : > { %935 = vmatpush.bf16.msra.mxu2 %v1798_v7  ;;  %v1794_v58 = vor.u32 %v2250_v55, %v1791_v56  ;;  %v1887_v59 = vld [vmem:[#allocation10 + $0xd8] sm:$0xf0]  ;;  %v2281_v1 = vld [vmem:[#allocation10 + $0x104] sm:$0xf0]  ;;  %v1783_v4 = vld [vmem:[#allocation10 + $0x8] sm:$0xf0] }
  0x63   : > { %962 = vmatpush.bf16.msrb.mxu0 %v1934_v8  ;;  %949 = vmatpush.bf16.msra.mxu3 %v1862_v10  ;;  %v1951_v61 = vld [vmem:[#allocation10 + $0x158] sm:$0xf0]  ;;  %v1910_v2 = vor.u32 %v2281_v1, %v1909_v0  ;;  %v2272_v5 = vld [vmem:[#allocation10 + $0xc4] sm:$0xf]  ;;  %v1879_v7 = vld [vmem:[#allocation10 + $0xc8] sm:$0xf0] }
  0x64   : > { %v1954_v63 = vor.u32 %v2290_v60, %v1951_v61  ;;  %v2288_v8 = vld [vmem:[#allocation10 + $0x144] sm:$0xf]  ;;  %v1882_v10 = vor.u32 %v2272_v5, %v1879_v7  ;;  %v2270_v12 = vld [vmem:[#allocation10 + $0xb4] sm:$0xf]  ;;  %v1871_v13 = vld [vmem:[#allocation10 + $0xb8] sm:$0xf0] }
  0x65   : > { %581 = vmatpush.bf16.msra.mxu1 %v2240_v9  ;;  %v2459_v9 = vld [vmem:[%s3103_s3] ss:$0 sm:$0xff]  ;;  %v2286_v14 = vld [vmem:[#allocation10 + $0x134] sm:$0xf]  ;;  %v1855_v25 = vld [vmem:[#allocation10 + $0x98] sm:$0xf0] }
  0x66   : > { %936 = vmatpush.bf16.msra.mxu2 %v1790_v15  ;;  %v1874_v15 = vor.u32 %v2270_v12, %v1871_v13  ;;  %v2282_v26 = vld [vmem:[#allocation10 + $0x114] sm:$0xf]  ;;  %v1919_v27 = vld [vmem:[#allocation10 + $0x118] sm:$0xf0]  ;;  %v2264_v30 = vld [vmem:[#allocation10 + $0x84] sm:$0xf] }
  0x67   : > { %950 = vmatpush.bf16.msra.mxu3 %v1854_v17  ;;  %963 = vmatpush.bf16.msrb.mxu0 %v1926_v42  ;;  %v1922_v29 = vor.u32 %v2282_v26, %v1919_v27  ;;  %v1847_v31 = vld [vmem:[#allocation10 + $0x88] sm:$0xf0]  ;;  %v2957_v38 = vshrl.u32 %v588_v36, 7  ;;  %v2460_v39 = vld [vmem:[%s3105_s5] ss:$0 sm:$0xff]  ;;  %s2674_s20 = scalar_lea.hbm %s2673_s18, 16 }
  0x68   : > { %v2327_v61 = vld [vmem:[#allocation10 + $0x274] sm:$0xf0]  ;;  %v2309_v0 = vld [vmem:[#allocation10 + $0x1e4] sm:$0xf0]  ;;  %v2104_v1 = vld [vmem:[#allocation10 + $0x260] sm:$0xf]  ;;  %p2675_p1 = scmp.ne.s32.totalorder %s2673_s18, %s2674_s20 }
  0x69   : > { %972 = vmatpush.bf16.msrb.mxu1 %v1842_v35  ;;  %v1903_v35 = vld [vmem:[#allocation10 + $0xf8] sm:$0xf0]  ;;  %v595_v40 = vand.u32 15, %v2957_v38  ;;  %vm621_vm2 = vcmp.lt.s32.totalorder %v2957_v38, 2  ;;  %vm628_vm3 = vcmp.lt.s32.totalorder %v2957_v38, 1  ;;  %v2350_v38 = vld [vmem:[#allocation11 + $0x30] sm:$0xff] }
  0x6a   : > { %937 = vmatpush.bf16.msra.mxu2 %v1782_v28  ;;  %v1906_v37 = vor.u32 %v2278_v34, %v1903_v35  ;;  %v1850_v34 = vor.u32 %v2264_v30, %v1847_v31  ;;  %v2032_v5 = vld [vmem:[#allocation10 + $0x1d0] sm:$0xf]  ;;  %v2341_v26 = vld [vmem:[#allocation10 + $0x2e4] sm:$0xf0]  ;;  %v3006_v27 = vld [vmem:[%s3107_s7] sm:$0x3]  ;;  %p2676_p3 = pnand %p2675_p1, %p2900_p13 }
  0x6b   : > { %951 = vmatpush.bf16.msra.mxu3 %v1846_v32  ;;  %964 = vmatpush.bf16.msrb.mxu0 %v1918_v54  ;;  %v2280_v32 = vld [vmem:[#allocation10 + $0x104] sm:$0xf]  ;;  %vm2353_vm1 = vcmp.ge.s32.totalorder %v595_v40, 2  ;;  %vm2354_vm4 = vcmp.ge.s32.totalorder %v595_v40, 1  ;;  %v2096_v7 = vld [vmem:[#allocation10 + $0x250] sm:$0xf] }
  0x6c   : > { %vm2975_vm6 = vmpackc.low %vm2747_vm5, %vm2353_vm1  ;;  %v2176_v13 = vld [vmem:[#allocation10 + $0x2f0] sm:$0xf]  ;;  %v2303_v30 = vld [vmem:[#allocation10 + $0x1b4] sm:$0xf0]  ;;  %p2677_p5 = pneg %p2676_p3  ;;  %s2678_s23 = scalar_lea.hbm %s3110_s10, 32 }
  0x6d   : > { %973 = vmatpush.bf16.msrb.mxu1 %v1834_v45  ;;  %v2276_v45 = vld [vmem:[#allocation10 + $0xe4] sm:$0xf]  ;;  %vm2987_vm7 = vmpackc.low %vm2747_vm5, %vm2354_vm4  ;;  %v2080_v31 = vld [vmem:[#allocation10 + $0x230] sm:$0xf]  ;;  %p2680_p8 = scmp.lt.s32.totalorder %s2678_s23, %s2674_s20 }
  0x6e   : > { %986 = vmatpush.bf16.msrb.mxu2 %v1906_v37  ;;  %v1898_v50 = vor.u32 %v2276_v45, %v1895_v47 }
  0x6f   : > { %1000 = vmatpush.bf16.msrb.mxu3 %v1970_v41  ;;  %965 = vmatpush.bf16.msrb.mxu0 %v1910_v2  ;;  %p2681_p7 = por %p2680_p8, %p2679_p12 }
  0x71   : > { %974 = vmatpush.bf16.msrb.mxu1 %v1826_v57  ;;  %v2274_v57 = vld [vmem:[#allocation10 + $0xd4] sm:$0xf]  ;;  %p2682_p9 = pnand %p2681_p7, %p2677_p5 }
  0x72   : > { %987 = vmatpush.bf16.msrb.mxu2 %v1898_v50  ;;  %v1890_v62 = vor.u32 %v2274_v57, %v1887_v59  ;;  %v2048_v57 = vld [vmem:[#allocation10 + $0x1f0] sm:$0xf] }
  0x73   : > { %1001 = vmatpush.bf16.msrb.mxu3 %v1962_v51  ;;  %v2112_v59 = vld [vmem:[#allocation10 + $0x270] sm:$0xf] }
  0x75   : > { %975 = vmatpush.bf16.msrb.mxu1 %v1818_v6 }
  0x76   : > { %988 = vmatpush.bf16.msrb.mxu2 %v1890_v62  ;;  %v2113_v62 = vor.u32 %v2327_v61, %v2112_v59  ;;  %v2152_v59 = vld [vmem:[#allocation10 + $0x2c0] sm:$0xf] }
  0x77   : > { %1002 = vmatpush.bf16.msrb.mxu3 %v1954_v63  ;;  %v2040_v63 = vld [vmem:[#allocation10 + $0x1e0] sm:$0xf] }
  0x78   : > { %v2041_v2 = vor.u32 %v2309_v0, %v2040_v63  ;;  %v2299_v63 = vld [vmem:[#allocation10 + $0x194] sm:$0xf0]  ;;  %v2064_v0 = vld [vmem:[#allocation10 + $0x210] sm:$0xf] }
  0x79   : > { %976 = vmatpush.bf16.msrb.mxu1 %v1810_v33  ;;  %v1911_v33 = vld [vmem:[#allocation10 + $0x108] sm:$0xf0] }
  0x7a   : > { %989 = vmatpush.bf16.msrb.mxu2 %v1882_v10  ;;  %v1914_v35 = vor.u32 %v2280_v32, %v1911_v33  ;;  %v2319_v33 = vld [vmem:[#allocation10 + $0x234] sm:$0xf0] }
  0x7d   : > { %977 = vmatpush.bf16.msrb.mxu1 %v1802_v46 }
  0x7e   : > { %990 = vmatpush.bf16.msrb.mxu2 %v1874_v15 }
  0x81   : > { %978 = vmatpush.bf16.msrb.mxu1 %v1794_v58  ;;  %v2311_v58 = vld [vmem:[#allocation10 + $0x1f4] sm:$0xf0] }
  0x82   : > { %v2049_v60 = vor.u32 %v2311_v58, %v2048_v57 }
  0x84   : > { %1369 = vmatpush.bf16.msra.mxu0 %v2049_v60  ;;  %v2337_v60 = vld [vmem:[#allocation10 + $0x2c4] sm:$0xf0] }
  0x85   : > { %v2153_v61 = vor.u32 %v2337_v60, %v2152_v59  ;;  %v2331_v59 = vld [vmem:[#allocation10 + $0x294] sm:$0xf0]  ;;  %v2298_v60 = vld [vmem:[#allocation10 + $0x194] sm:$0xf] }
  0x88   : > { %1370 = vmatpush.bf16.msra.mxu0 %v2041_v2 }
  0xc8   : > { %v496_v3 = vpop.f32.mrf.mxu0 }
  0xc9   : > { %v497_v16 = vadd.f32 %v2459_v9, %v496_v3  ;;  %v2248_v3 = vld [vmem:[#allocation10 + $0x4] sm:$0xf] }
  0xca   : > { %v1786_v6 = vor.u32 %v2248_v3, %v1783_v4  ;;  %v2325_v3 = vld [vmem:[#allocation10 + $0x264] sm:$0xf0] }
  0xcb   : > { %v503_v22 = vadd.f32 %v501_v18, %v497_v16  ;;  %v1935_v16 = vld [vmem:[#allocation10 + $0x138] sm:$0xf0]  ;;  %v2268_v18 = vld [vmem:[#allocation10 + $0xa4] sm:$0xf]  ;;  %v2105_v4 = vor.u32 %v2325_v3, %v2104_v1  ;;  %v2315_v3 = vld [vmem:[#allocation10 + $0x214] sm:$0xf0] }
  0xcc   : > { %979 = vmatpush.bf16.msrb.mxu1 %v1786_v6  ;;  %v1938_v17 = vor.u32 %v2286_v14, %v1935_v16  ;;  %v2307_v6 = vld [vmem:[#allocation10 + $0x1d4] sm:$0xf0]  ;;  %v2024_v16 = vld [vmem:[#allocation10 + $0x1c0] sm:$0xf] }
  0xcd   : > { %v2343_v14 = vld [vmem:[#allocation10 + $0x2f4] sm:$0xf0] }
  0xce   : > { %v2177_v15 = vor.u32 %v2343_v14, %v2176_v13  ;;  %v2335_v13 = vld [vmem:[#allocation10 + $0x2b4] sm:$0xf0] }
  0xd0   : > { %v498_v19 = vpop.f32.mrf.mxu0 }
  0xd1   : > { %v499_v21 = vadd.f32 %v2459_v9, %v498_v19  ;;  %v1943_v9 = vld [vmem:[#allocation10 + $0x148] sm:$0xf0] }
  0xd2   : > { %v1946_v11 = vor.u32 %v2288_v8, %v1943_v9  ;;  %v1863_v19 = vld [vmem:[#allocation10 + $0xa8] sm:$0xf0]  ;;  %v2033_v8 = vor.u32 %v2307_v6, %v2032_v5  ;;  %v2323_v9 = vld [vmem:[#allocation10 + $0x254] sm:$0xf0] }
  0xd3   : > { %v504_v23 = vadd.f32 %v502_v20, %v499_v21  ;;  %v1866_v20 = vor.u32 %v2268_v18, %v1863_v19  ;;  %v2284_v21 = vld [vmem:[#allocation10 + $0x124] sm:$0xf]  ;;  %v2097_v12 = vor.u32 %v2323_v9, %v2096_v7  ;;  %v2088_v18 = vld [vmem:[#allocation10 + $0x240] sm:$0xf]  ;;  %v2026_v5 = vld [vmem:[#allocation10 + $0x1c8] sm:$0xf0] }
  0xd4   : > { %1003 = vmatpush.bf16.msrb.mxu3 %v1946_v11  ;;  %1371 = vmatpush.bf16.msra.mxu0 %v2033_v8  ;;  %v2065_v8 = vor.u32 %v2315_v3, %v2064_v0  ;;  %v2098_v0 = vld [vmem:[#allocation10 + $0x258] sm:$0xf0] }
  0xd5   : > { %v505_v24 = vpack.c.bf16 %v504_v23, %v503_v22  ;;  %v1927_v22 = vld [vmem:[#allocation10 + $0x128] sm:$0xf0]  ;;  %991 = vmatpush.bf16.msrb.mxu2 %v1866_v20  ;;  %v2321_v20 = vld [vmem:[#allocation10 + $0x244] sm:$0xf0] }
  0xd6   : > { %v1930_v23 = vor.u32 %v2284_v21, %v1927_v22  ;;  %v2310_v21 = vld [vmem:[#allocation10 + $0x1f4] sm:$0xf]  ;;  %v2050_v22 = vld [vmem:[#allocation10 + $0x1f8] sm:$0xf0] }
  0xd7   : > { %582 = vmatmul.bf16.vlgmr.msra.gmra.mxu1 %v505_v24  ;;  %v2266_v24 = vld [vmem:[#allocation10 + $0x94] sm:$0xf] }
  0xd8   : > { %1004 = vmatpush.bf16.msrb.mxu3 %v1938_v17  ;;  %v1858_v28 = vor.u32 %v2266_v24, %v1855_v25  ;;  %1383 = vmatpush.bf16.msra.mxu1 %v2113_v62  ;;  %v2305_v17 = vld [vmem:[#allocation10 + $0x1c4] sm:$0xf0]  ;;  %v2053_v24 = vor.u32 %v2310_v21, %v2050_v22  ;;  %v2168_v25 = vld [vmem:[#allocation10 + $0x2e0] sm:$0xf]  ;;  %v2000_v62 = vld [vmem:[#allocation10 + $0x190] sm:$0xf] }
  0xd9   : > { %v2025_v19 = vor.u32 %v2305_v17, %v2024_v16  ;;  %v2001_v2 = vor.u32 %v2299_v63, %v2000_v62  ;;  %v1992_v16 = vld [vmem:[#allocation10 + $0x180] sm:$0xf]  ;;  %v2297_v17 = vld [vmem:[#allocation10 + $0x184] sm:$0xf0]  ;;  %v2302_v22 = vld [vmem:[#allocation10 + $0x1b4] sm:$0xf] }
  0xda   : > { %992 = vmatpush.bf16.msrb.mxu2 %v1858_v28  ;;  %v2169_v28 = vor.u32 %v2341_v26, %v2168_v25  ;;  %v2313_v21 = vld [vmem:[#allocation10 + $0x204] sm:$0xf0]  ;;  %v2002_v62 = vld [vmem:[#allocation10 + $0x198] sm:$0xf0]  ;;  %v2322_v63 = vld [vmem:[#allocation10 + $0x254] sm:$0xf] }
  0xdb   : > { %1372 = vmatpush.bf16.msra.mxu0 %v2025_v19  ;;  %v2101_v3 = vor.u32 %v2322_v63, %v2098_v0  ;;  %v2328_v63 = vld [vmem:[#allocation10 + $0x284] sm:$0xf]  ;;  %v2122_v0 = vld [vmem:[#allocation10 + $0x288] sm:$0xf0] }
  0xdc   : > { %1005 = vmatpush.bf16.msrb.mxu3 %v1930_v23  ;;  %1384 = vmatpush.bf16.msra.mxu1 %v2105_v4  ;;  %v2089_v23 = vor.u32 %v2321_v20, %v2088_v18  ;;  %v2304_v4 = vld [vmem:[#allocation10 + $0x1c4] sm:$0xf]  ;;  %v2056_v18 = vld [vmem:[#allocation10 + $0x200] sm:$0xf]  ;;  %v1993_v20 = vor.u32 %v2297_v17, %v1992_v16  ;;  %v1994_v16 = vld [vmem:[#allocation10 + $0x188] sm:$0xf0] }
  0xdd   : > { %v2029_v9 = vor.u32 %v2304_v4, %v2026_v5  ;;  %v2057_v25 = vor.u32 %v2313_v21, %v2056_v18  ;;  %v2338_v4 = vld [vmem:[#allocation10 + $0x2d4] sm:$0xf]  ;;  %v2162_v5 = vld [vmem:[#allocation10 + $0x2d8] sm:$0xf0]  ;;  %v2320_v17 = vld [vmem:[#allocation10 + $0x244] sm:$0xf] }
  0xde   : > { %993 = vmatpush.bf16.msrb.mxu2 %v1850_v34  ;;  %v2308_v34 = vld [vmem:[#allocation10 + $0x1e4] sm:$0xf]  ;;  %v2090_v18 = vld [vmem:[#allocation10 + $0x248] sm:$0xf0] }
  0xdf   : > { %v2336_v21 = vld [vmem:[#allocation10 + $0x2c4] sm:$0xf] }
  0xe0   : > { %1006 = vmatpush.bf16.msrb.mxu3 %v1922_v29  ;;  %1385 = vmatpush.bf16.msra.mxu1 %v2097_v12  ;;  %v2016_v29 = vld [vmem:[#allocation10 + $0x1b0] sm:$0xf] }
  0xe1   : > { %v2017_v32 = vor.u32 %v2303_v30, %v2016_v29  ;;  %v2144_v12 = vld [vmem:[#allocation10 + $0x2b0] sm:$0xf]  ;;  %v2114_v29 = vld [vmem:[#allocation10 + $0x278] sm:$0xf0]  ;;  %v2342_v30 = vld [vmem:[#allocation10 + $0x2f4] sm:$0xf] }
  0xe3   : > { %1373 = vmatpush.bf16.msra.mxu0 %v2017_v32 }
  0xe4   : > { %1007 = vmatpush.bf16.msrb.mxu3 %v1914_v35  ;;  %1386 = vmatpush.bf16.msra.mxu1 %v2089_v23  ;;  %v2042_v35 = vld [vmem:[#allocation10 + $0x1e8] sm:$0xf0]  ;;  %v2018_v23 = vld [vmem:[#allocation10 + $0x1b8] sm:$0xf0] }
  0xe5   : > { %v2045_v40 = vor.u32 %v2308_v34, %v2042_v35  ;;  %v2021_v26 = vor.u32 %v2302_v22, %v2018_v23  ;;  %v2136_v34 = vld [vmem:[#allocation10 + $0x2a0] sm:$0xf]  ;;  %v2154_v22 = vld [vmem:[#allocation10 + $0x2c8] sm:$0xf0] }
  0xe6   : > { %v2157_v23 = vor.u32 %v2336_v21, %v2154_v22 }
 0x154   : > { %v583_v37 = vpop.f32.mrf.mxu1 }
 0x155   : > { %v2963_v41 = vadd.f32 %v2460_v39, %v583_v37 }
 0x157   : > { %v619_v44 = vrot.slane %v2963_v41, 6  ;;  %v626_v45 = vrot.slane %v2963_v41, 7 }
 0x15c   : > { %v585_v42 = vpop.f32.mrf.mxu1 }
 0x15d   : > { %v2965_v43 = vadd.f32 %v2460_v39, %v585_v42  ;;  %v2081_v39 = vor.u32 %v2319_v33, %v2080_v31  ;;  %v2160_v42 = vld [vmem:[#allocation10 + $0x2d0] sm:$0xf]  ;;  %v2178_v33 = vld [vmem:[#allocation10 + $0x2f8] sm:$0xf0] }
 0x15e   : > { %v2181_v35 = vor.u32 %v2342_v30, %v2178_v33  ;;  %v2146_v30 = vld [vmem:[#allocation10 + $0x2b8] sm:$0xf0]  ;;  %v2316_v33 = vld [vmem:[#allocation10 + $0x224] sm:$0xf] }
 0x15f   : > { %v620_v46 = vrot.slane %v2965_v43, 6  ;;  %v627_v47 = vrot.slane %v2965_v43, 7  ;;  %v635_v48 = vpack.c.bf16 %v2965_v43, %v2963_v41  ;;  %1387 = vmatpush.bf16.msra.mxu1 %v2081_v39  ;;  %v2333_v39 = vld [vmem:[#allocation10 + $0x2a4] sm:$0xf0] }
 0x161   : > { %966 = vmatmul.bf16.vlgmr.msrb.gmra.mxu0 %v635_v48  ;;  %v622_v50 = vsel %vm621_vm2, %v619_v44, %v620_v46  ;;  %v623_v51 = vsel %vm621_vm2, %v620_v46, %v619_v44  ;;  %v629_v52 = vsel %vm628_vm3, %v626_v45, %v627_v47  ;;  %v630_v53 = vsel %vm628_vm3, %v627_v47, %v626_v45  ;;  %v2339_v44 = vld [vmem:[#allocation10 + $0x2d4] sm:$0xf0] }
 0x162   : > { %v1973_v55 = vpack.c.bf16 %v622_v50, %v623_v51  ;;  %v1977_v56 = vpack.c.bf16 %v629_v52, %v630_v53  ;;  %v687_v45 = vperm.slane %v3006_v27, 1  ;;  %v2161_v46 = vor.u32 %v2339_v44, %v2160_v42  ;;  %v2301_v50 = vld [vmem:[#allocation10 + $0x1a4] sm:$0xf0]  ;;  %v2072_v51 = vld [vmem:[#allocation10 + $0x220] sm:$0xf] }
 0x163   : > { %v2317_v53 = vld [vmem:[#allocation10 + $0x224] sm:$0xf0]  ;;  %v2137_v42 = vor.u32 %v2333_v39, %v2136_v34  ;;  %v2300_v44 = vld [vmem:[#allocation10 + $0x1a4] sm:$0xf]  ;;  %v2074_v34 = vld [vmem:[#allocation10 + $0x228] sm:$0xf0] }
 0x164   : > { %1974 = vmatmul.msk.bf16.vlgmr.msra.gmra.mxu2 %vm2975_vm6, %v1973_v55  ;;  %1978 = vmatmul.msk.bf16.vlgmr.msra.gmra.mxu3 %vm2987_vm7, %v1977_v56  ;;  %v2073_v57 = vor.u32 %v2317_v53, %v2072_v51  ;;  %v2106_v51 = vld [vmem:[#allocation10 + $0x268] sm:$0xf0] }
 0x165   : > { %1982 = vmatmul.msk.bf16.vlgmr.msrb.gmra.mxu1 %vm2975_vm6, %v1973_v55  ;;  %1397 = vmatpush.bf16.msra.mxu2 %v2177_v15  ;;  %v2306_v55 = vld [vmem:[#allocation10 + $0x1d4] sm:$0xf]  ;;  %v2145_v15 = vor.u32 %v2335_v13, %v2144_v12  ;;  %v2170_v53 = vld [vmem:[#allocation10 + $0x2e8] sm:$0xf0] }
 0x166   : > { %1411 = vmatpush.bf16.msra.mxu3 %v2053_v24  ;;  %1388 = vmatpush.bf16.msra.mxu1 %v2073_v57 }
 0x169   : > { %1398 = vmatpush.bf16.msra.mxu2 %v2169_v28  ;;  %v2326_v28 = vld [vmem:[#allocation10 + $0x274] sm:$0xf] }
 0x16a   : > { %1412 = vmatpush.bf16.msra.mxu3 %v2045_v40  ;;  %1389 = vmatpush.bf16.msra.mxu1 %v2065_v8  ;;  %v2117_v32 = vor.u32 %v2326_v28, %v2114_v29  ;;  %v2329_v8 = vld [vmem:[#allocation10 + $0x284] sm:$0xf0]  ;;  %v686_v28 = vperm.slane %v3006_v27, 0 }
 0x16d   : > { %1399 = vmatpush.bf16.msra.mxu2 %v2161_v46  ;;  %v2010_v46 = vld [vmem:[#allocation10 + $0x1a8] sm:$0xf0] }
 0x16e   : > { %1390 = vmatpush.bf16.msra.mxu1 %v2057_v25  ;;  %v2082_v25 = vld [vmem:[#allocation10 + $0x238] sm:$0xf0] }
 0x171   : > { %1400 = vmatpush.bf16.msra.mxu2 %v2153_v61 }
 0x172   : > { %1439 = vmatpush.bf16.msrb.mxu1 %v2181_v35  ;;  %v2332_v35 = vld [vmem:[#allocation10 + $0x2a4] sm:$0xf] }
 0x174   : > { %1986 = vmatmul.msk.bf16.vlgmr.msrb.gmra.mxu2 %vm2987_vm7, %v1977_v56  ;;  %1008 = vmatmul.bf16.vlgmr.msrb.gmra.mxu3 %v635_v48  ;;  %v2008_v48 = vld [vmem:[#allocation10 + $0x1a0] sm:$0xf]  ;;  %v2034_v56 = vld [vmem:[#allocation10 + $0x1d8] sm:$0xf0] }
 0x175   : > { %v2009_v52 = vor.u32 %v2301_v50, %v2008_v48  ;;  %v2037_v58 = vor.u32 %v2306_v55, %v2034_v56  ;;  %1401 = vmatpush.bf16.msra.mxu2 %v2145_v15  ;;  %v2013_v50 = vor.u32 %v2300_v44, %v2010_v46  ;;  %v2296_v15 = vld [vmem:[#allocation10 + $0x184] sm:$0xf]  ;;  %v2077_v46 = vor.u32 %v2316_v33, %v2074_v34 }
 0x177   : > { %1374 = vmatpush.bf16.msra.mxu0 %v2009_v52  ;;  %1413 = vmatpush.bf16.msra.mxu3 %v2037_v58  ;;  %v2340_v52 = vld [vmem:[#allocation10 + $0x2e4] sm:$0xf]  ;;  %v2128_v58 = vld [vmem:[#allocation10 + $0x290] sm:$0xf] }
 0x178   : > { %v2173_v57 = vor.u32 %v2340_v52, %v2170_v53  ;;  %v2129_v61 = vor.u32 %v2331_v59, %v2128_v58  ;;  %v2330_v52 = vld [vmem:[#allocation10 + $0x294] sm:$0xf]  ;;  %v2130_v53 = vld [vmem:[#allocation10 + $0x298] sm:$0xf0] }
 0x179   : > { %1402 = vmatpush.bf16.msra.mxu2 %v2137_v42  ;;  %v2138_v42 = vld [vmem:[#allocation10 + $0x2a8] sm:$0xf0] }
 0x17a   : > { %1440 = vmatpush.bf16.msrb.mxu1 %v2173_v57  ;;  %v2141_v27 = vor.u32 %v2332_v35, %v2138_v42  ;;  %v2351_v42 = vld [vmem:[#allocation11 + $0x38] sm:$0xff] }
 0x17b   : > { %1375 = vmatpush.bf16.msra.mxu0 %v2001_v2  ;;  %1414 = vmatpush.bf16.msra.mxu3 %v2029_v9  ;;  %v2005_v2 = vor.u32 %v2298_v60, %v2002_v62 }
 0x17d   : > { %1403 = vmatpush.bf16.msra.mxu2 %v2129_v61  ;;  %v2058_v61 = vld [vmem:[#allocation10 + $0x208] sm:$0xf0] }
 0x17f   : > { %1376 = vmatpush.bf16.msra.mxu0 %v1993_v20  ;;  %1415 = vmatpush.bf16.msra.mxu3 %v2021_v26  ;;  %v2093_v20 = vor.u32 %v2320_v17, %v2090_v18  ;;  %v2334_v26 = vld [vmem:[#allocation10 + $0x2b4] sm:$0xf] }
 0x183   : > { %1425 = vmatpush.bf16.msrb.mxu0 %v2117_v32  ;;  %1416 = vmatpush.bf16.msra.mxu3 %v2013_v50  ;;  %v2149_v32 = vor.u32 %v2334_v26, %v2146_v30  ;;  %v2066_v50 = vld [vmem:[#allocation10 + $0x218] sm:$0xf0] }
 0x187   : > { %1417 = vmatpush.bf16.msra.mxu3 %v2005_v2 }
 0x1de   : > { %v967_v59 = vpop.f32.mrf.mxu0 }
 0x1e2   : > { %v981_v47 = vpop.f32.mrf.mxu1 }
 0x1e3   : > { %v982_v1 = vadd.f32 %v981_v47, %v687_v45  ;;  %v2324_v47 = vld [vmem:[#allocation10 + $0x264] sm:$0xf] }
 0x1e4   : > { %v2109_v56 = vor.u32 %v2324_v47, %v2106_v51 }
 0x1e6   : > { %1426 = vmatpush.bf16.msrb.mxu0 %v2109_v56  ;;  %v969_v17 = vpop.f32.mrf.mxu0 }
 0x1e7   : > { %v2999_v10 = vpop.f32.mrf.mxu2  ;;  %v3001_v11 = vpop.f32.mrf.mxu3 }
 0x1e8   : > { %v940_v47 = vadd.f32 %v2999_v10, %v686_v28  ;;  %v2133_v10 = vor.u32 %v2330_v52, %v2130_v53 }
 0x1ea   : > { %v983_v24 = vpop.f32.mrf.mxu1  ;;  %1427 = vmatpush.bf16.msrb.mxu0 %v2101_v3  ;;  %v954_v60 = vadd.f32 %v3001_v11, %v940_v47  ;;  %v2349_v47 = vld [vmem:[#allocation11 + $0x28] sm:$0xff] }
 0x1eb   : > { %v984_v40 = vadd.f32 %v983_v24, %v687_v45  ;;  %v2318_v24 = vld [vmem:[#allocation10 + $0x234] sm:$0xf] }
 0x1ec   : > { %v2085_v29 = vor.u32 %v2318_v24, %v2082_v25 }
 0x1ee   : > { %1428 = vmatpush.bf16.msrb.mxu0 %v2093_v20 }
 0x1ef   : > { %v3008_v36 = vpop.f32.mrf.mxu2  ;;  %v3010_v37 = vpop.f32.mrf.mxu3 }
 0x1f0   : > { %v942_v2 = vadd.f32 %v3008_v36, %v686_v28 }
 0x1f2   : > { %1429 = vmatpush.bf16.msrb.mxu0 %v2085_v29 }
 0x1f6   : > { %1430 = vmatpush.bf16.msrb.mxu0 %v2077_v46 }
 0x1f7   : > { %v995_v6 = vpop.f32.mrf.mxu2  ;;  %v1009_v7 = vpop.f32.mrf.mxu3 }
 0x1f8   : > { %v996_v14 = vadd.f32 %v995_v6, %v982_v1  ;;  %v2120_v6 = vld [vmem:[#allocation10 + $0x280] sm:$0xf] }
 0x1f9   : > { %v2121_v13 = vor.u32 %v2329_v8, %v2120_v6  ;;  %v968_v6 = vadd.f32 %v967_v59, %v954_v60  ;;  %v2125_v8 = vor.u32 %v2328_v63, %v2122_v0  ;;  %v2344_v0 = vld [vmem:[#allocation11] sm:$0xff] }
 0x1fa   : > { %v1010_v19 = vadd.f32 %v1009_v7, %v996_v14  ;;  %v2165_v7 = vor.u32 %v2338_v4, %v2162_v5 }
 0x1fb   : > { %1404 = vmatpush.bf16.msra.mxu2 %v2121_v13 }
 0x1fc   : > { %v1987_v31 = vmul.f32 -1.442695, %v1010_v19  ;;  %1441 = vmatpush.bf16.msrb.mxu1 %v2165_v7  ;;  %v1997_v19 = vor.u32 %v2296_v15, %v1994_v16 }
 0x1fe   : > { %2462 = vpow2.f32 %v1987_v31  ;;  %1418 = vmatpush.bf16.msra.mxu3 %v1997_v19 }
 0x1ff   : > { %v997_v48 = vpop.f32.mrf.mxu2  ;;  %v1011_v45 = vpop.f32.mrf.mxu3  ;;  %1566 = vmatpush.bf16.msrb.mxu2 %v2351_v42 }
 0x200   : > { %v998_v55 = vadd.f32 %v997_v48, %v984_v40  ;;  %1442 = vmatpush.bf16.msrb.mxu1 %v2157_v23  ;;  %v2314_v48 = vld [vmem:[#allocation10 + $0x214] sm:$0xf] }
 0x201   : > { %v2069_v58 = vor.u32 %v2314_v48, %v2066_v50  ;;  %v2348_v50 = vld [vmem:[#allocation11 + $0x20] sm:$0xff] }
 0x202   : > { %v1012_v1 = vadd.f32 %v1011_v45, %v998_v55  ;;  %v2312_v45 = vld [vmem:[#allocation10 + $0x204] sm:$0xf] }
 0x203   : > { %1431 = vmatpush.bf16.msrb.mxu0 %v2069_v58  ;;  %v2061_v11 = vor.u32 %v2312_v45, %v2058_v61  ;;  %1567 = vmatpush.bf16.msrb.mxu2 %v2350_v38 }
 0x204   : > { %v2463_v9 = vpop.eup %2462  ;;  %v1988_v12 = vmul.f32 -1.442695, %v1012_v1  ;;  %1443 = vmatpush.bf16.msrb.mxu1 %v2149_v32 }
 0x205   : > { %v3017_v14 = vadd.f32 1.0, %v2463_v9 }
 0x206   : > { %2464 = vpow2.f32 %v1988_v12 }
 0x207   : > { %2466 = vrcp.f32 %v3017_v14  ;;  %v1033_v55 = vand.u32 2147483648, %v3017_v14  ;;  %v1031_v57 = vand.u32 2147483647, %v3017_v14  ;;  %vm1027_vm9 = vweird.f32 %v3017_v14  ;;  %1432 = vmatpush.bf16.msrb.mxu0 %v2061_v11  ;;  %1568 = vmatpush.bf16.msrb.mxu2 %v2349_v47  ;;  %v2461_v47 = vld [vmem:[%s3109_s9] ss:$0 sm:$0xff] }
 0x208   : > { %1444 = vmatpush.bf16.msrb.mxu1 %v2141_v27  ;;  %v1989_v27 = vld [vmem:[%s3107_s7 + $0x2] sm:$0x3] }
 0x209   : > { %v1034_v3 = vor.u32 1.1754944e-38, %v1033_v55  ;;  %vm1032_vm11 = vcmp.eq.f32.partialorder %v1031_v57, 8.507059e+37  ;;  %v1126_v49 = vperm.slane %v1989_v27, 1  ;;  %v2347_v55 = vld [vmem:[#allocation11 + $0x18] sm:$0xff]  ;;  %v2346_v57 = vld [vmem:[#allocation11 + $0x10] sm:$0xff]  ;;  %v1125_v11 = vperm.slane %v1989_v27, 0 }
 0x20b   : > { %1569 = vmatpush.bf16.msrb.mxu2 %v2348_v50 }
 0x20c   : > { %v2465_v31 = vpop.eup %2464  ;;  %1445 = vmatpush.bf16.msrb.mxu1 %v2133_v10  ;;  %v2345_v10 = vld [vmem:[#allocation11 + $0x8] sm:$0xff] }
 0x20d   : > { %v2467_v39 = vpop.eup %2466  ;;  %v1021_v40 = vadd.f32 1.0, %v2465_v31 }
 0x20e   : > { %v1023_v44 = vmul.f32 %v2467_v39, %v3017_v14  ;;  %vm1028_vm8 = vweird.f32 %v2467_v39  ;;  %v956_v14 = vadd.f32 %v3010_v37, %v942_v2 }
 0x20f   : > { %2468 = vrcp.f32 %v1021_v40  ;;  %vm1029_vm10 = vmor %vm1027_vm9, %vm1028_vm8  ;;  %v1048_v12 = vand.u32 2147483648, %v1021_v40  ;;  %v1046_v36 = vand.u32 2147483647, %v1021_v40  ;;  %vm1042_vm13 = vweird.f32 %v1021_v40  ;;  %1570 = vmatpush.bf16.msrb.mxu2 %v2347_v55 }
 0x210   : > { %v1024_v51 = vsub.f32 1.0, %v1023_v44  ;;  %1446 = vmatpush.bf16.msrb.mxu1 %v2125_v8  ;;  %v970_v20 = vadd.f32 %v969_v17, %v956_v14 }
 0x211   : > { %v1049_v18 = vor.u32 1.1754944e-38, %v1048_v12  ;;  %vm1047_vm15 = vcmp.eq.f32.partialorder %v1046_v36, 8.507059e+37 }
 0x212   : > { %v1025_v56 = vmul.f32 %v2467_v39, %v1024_v51 }
 0x213   : > { %1571 = vmatpush.bf16.msrb.mxu2 %v2346_v57 }
 0x214   : > { %v1026_v62 = vadd.f32 %v2467_v39, %v1025_v56 }
 0x215   : > { %v2469_v1 = vpop.eup %2468 }
 0x216   : > { %v1030_v4 = vsel %vm1029_vm10, %v2467_v39, %v1026_v62  ;;  %v1038_v5 = vmul.f32 %v2469_v1, %v1021_v40  ;;  %vm1043_vm12 = vweird.f32 %v2469_v1 }
 0x217   : > { %v1035_v7 = vsel %vm1032_vm11, %v1034_v3, %v1030_v4  ;;  %vm1044_vm14 = vmor %vm1042_vm13, %vm1043_vm12  ;;  %1572 = vmatpush.bf16.msrb.mxu2 %v2345_v10 }
 0x218   : > { %v1039_v9 = vsub.f32 1.0, %v1038_v5  ;;  %v1052_v13 = vmul.f32 %v1035_v7, %v968_v6 }
 0x21a   : > { %v1040_v15 = vmul.f32 %v2469_v1, %v1039_v9  ;;  %v1054_v19 = vadd.f32 %v1052_v13, %v2963_v41 }
 0x21b   : > { %1573 = vmatpush.bf16.msrb.mxu2 %v2344_v0 }
 0x21c   : > { %v1041_v16 = vadd.f32 %v2469_v1, %v1040_v15  ;;  %v3031_v24 = vmul.f32 0.70710677, %v1054_v19 }
 0x21e   : > { %v1045_v21 = vsel %vm1044_vm14, %v2469_v1, %v1041_v16  ;;  %v1058_v26 = vrot.slane %v3031_v24, 6  ;;  %v1064_v41 = vrot.slane %v3031_v24, 7 }
 0x21f   : > { %v1050_v22 = vsel %vm1047_vm15, %v1049_v18, %v1045_v21 }
 0x220   : > { %v1053_v23 = vmul.f32 %v1050_v22, %v970_v20 }
 0x222   : > { %v1055_v37 = vadd.f32 %v1053_v23, %v2965_v43 }
 0x224   : > { %v3034_v25 = vmul.f32 0.70710677, %v1055_v37 }
 0x226   : > { %v1072_v28 = vpack.c.bf16 %v3034_v25, %v3031_v24  ;;  %v1059_v29 = vrot.slane %v3034_v25, 6  ;;  %v1065_v30 = vrot.slane %v3034_v25, 7 }
 0x228   : > { %1405 = vmatmul.bf16.vlgmr.msra.gmra.mxu2 %v1072_v28  ;;  %v1060_v31 = vsel %vm621_vm2, %v1058_v26, %v1059_v29  ;;  %v1061_v43 = vsel %vm621_vm2, %v1059_v29, %v1058_v26  ;;  %v1066_v32 = vsel %vm628_vm3, %v1064_v41, %v1065_v30  ;;  %v1067_v33 = vsel %vm628_vm3, %v1065_v30, %v1064_v41 }
 0x229   : > { %v2184_v34 = vpack.c.bf16 %v1060_v31, %v1061_v43  ;;  %v2188_v35 = vpack.c.bf16 %v1066_v32, %v1067_v33 }
 0x22b   : > { %2185 = vmatmul.msk.bf16.vlgmr.msra.gmra.mxu0 %vm2975_vm6, %v2184_v34  ;;  %2189 = vmatmul.msk.bf16.vlgmr.msra.gmra.mxu1 %vm2987_vm7, %v2188_v35 }
 0x22c   : > { %2193 = vmatmul.msk.bf16.vlgmr.msra.gmra.mxu3 %vm2975_vm6, %v2184_v34 }
 0x23b   : > { %2197 = vmatmul.msk.bf16.vlgmr.msrb.gmra.mxu0 %vm2987_vm7, %v2188_v35  ;;  %1447 = vmatmul.bf16.vlgmr.msrb.gmra.mxu1 %v1072_v28 }
 0x2a8   : > { %v1378_v39 = vpop.f32.mrf.mxu0  ;;  %v1392_v40 = vpop.f32.mrf.mxu1 }
 0x2a9   : > { %v1379_v9 = vadd.f32 %v1378_v39, %v1125_v11 }
 0x2ab   : > { %v1406_v12 = vpop.f32.mrf.mxu2  ;;  %v1393_v17 = vadd.f32 %v1392_v40, %v1379_v9 }
 0x2ad   : > { %v1407_v23 = vadd.f32 %v1406_v12, %v1393_v17 }
 0x2af   : > { %v1420_v48 = vpop.f32.mrf.mxu3 }
 0x2b0   : > { %v1380_v44 = vpop.f32.mrf.mxu0  ;;  %v1394_v46 = vpop.f32.mrf.mxu1  ;;  %v1421_v54 = vadd.f32 %v1420_v48, %v1126_v49 }
 0x2b1   : > { %v1381_v18 = vadd.f32 %v1380_v44, %v1125_v11 }
 0x2b3   : > { %v1395_v28 = vadd.f32 %v1394_v46, %v1381_v18  ;;  %v1408_v30 = vpop.f32.mrf.mxu2 }
 0x2b5   : > { %v1409_v33 = vadd.f32 %v1408_v30, %v1395_v28 }
 0x2b7   : > { %v1422_v58 = vpop.f32.mrf.mxu3 }
 0x2b8   : > { %v1434_v51 = vpop.f32.mrf.mxu0  ;;  %v1448_v52 = vpop.f32.mrf.mxu1  ;;  %v1423_v60 = vadd.f32 %v1422_v58, %v1126_v49 }
 0x2b9   : > { %v1435_v53 = vadd.f32 %v1434_v51, %v1421_v54 }
 0x2bb   : > { %v1449_v56 = vadd.f32 %v1448_v52, %v1435_v53 }
 0x2bd   : > { %v2198_v59 = vmul.f32 -1.442695, %v1449_v56 }
 0x2bf   : > { %2470 = vpow2.f32 %v2198_v59 }
 0x2c0   : > { %v1436_v45 = vpop.f32.mrf.mxu0  ;;  %v1450_v62 = vpop.f32.mrf.mxu1 }
 0x2c1   : > { %v1437_v61 = vadd.f32 %v1436_v45, %v1423_v60 }
 0x2c3   : > { %v1451_v63 = vadd.f32 %v1450_v62, %v1437_v61 }
 0x2c5   : > { %v2471_v1 = vpop.eup %2470  ;;  %v2199_v2 = vmul.f32 -1.442695, %v1451_v63 }
 0x2c6   : > { %v1459_v3 = vadd.f32 1.0, %v2471_v1 }
 0x2c7   : > { %2472 = vpow2.f32 %v2199_v2 }
 0x2c8   : > { %2474 = vrcp.f32 %v1459_v3  ;;  %v1472_v14 = vand.u32 2147483648, %v1459_v3  ;;  %vm1466_vm1 = vweird.f32 %v1459_v3  ;;  %v1470_v36 = vand.u32 2147483647, %v1459_v3 }
 0x2ca   : > { %v1473_v21 = vor.u32 1.1754944e-38, %v1472_v14  ;;  %vm1471_vm3 = vcmp.eq.f32.partialorder %v1470_v36, 8.507059e+37 }
 0x2cd   : > { %v2473_v4 = vpop.eup %2472 }
 0x2ce   : > { %v2475_v5 = vpop.eup %2474  ;;  %v1460_v6 = vadd.f32 1.0, %v2473_v4 }
 0x2cf   : > { %v1462_v7 = vmul.f32 %v2475_v5, %v1459_v3  ;;  %vm1467_vm0 = vweird.f32 %v2475_v5 }
 0x2d0   : > { %2476 = vrcp.f32 %v1460_v6  ;;  %vm1468_vm2 = vmor %vm1466_vm1, %vm1467_vm0  ;;  %v1487_v37 = vand.u32 2147483648, %v1460_v6  ;;  %v1485_v41 = vand.u32 2147483647, %v1460_v6  ;;  %vm1481_vm5 = vweird.f32 %v1460_v6 }
 0x2d1   : > { %v1463_v8 = vsub.f32 1.0, %v1462_v7 }
 0x2d2   : > { %v1488_v32 = vor.u32 1.1754944e-38, %v1487_v37  ;;  %vm1486_vm7 = vcmp.eq.f32.partialorder %v1485_v41, 8.507059e+37 }
 0x2d3   : > { %v1464_v13 = vmul.f32 %v2475_v5, %v1463_v8 }
 0x2d5   : > { %v1465_v15 = vadd.f32 %v2475_v5, %v1464_v13 }
 0x2d6   : > { %v2477_v16 = vpop.eup %2476 }
 0x2d7   : > { %v1477_v19 = vmul.f32 %v2477_v16, %v1460_v6  ;;  %v1469_v20 = vsel %vm1468_vm2, %v2475_v5, %v1465_v15  ;;  %vm1482_vm4 = vweird.f32 %v2477_v16 }
 0x2d8   : > { %v1474_v26 = vsel %vm1471_vm3, %v1473_v21, %v1469_v20  ;;  %vm1483_vm6 = vmor %vm1481_vm5, %vm1482_vm4 }
 0x2d9   : > { %v1478_v22 = vsub.f32 1.0, %v1477_v19  ;;  %v1491_v43 = vmul.f32 %v1474_v26, %v1407_v23 }
 0x2db   : > { %v1479_v29 = vmul.f32 %v2477_v16, %v1478_v22  ;;  %v1493_v40 = vadd.f32 %v1491_v43, %v3031_v24 }
 0x2dd   : > { %v1480_v31 = vadd.f32 %v2477_v16, %v1479_v29  ;;  %v1495_v38 = vmul.f32 0.70710677, %v1493_v40 }
 0x2df   : > { %v1484_v34 = vsel %vm1483_vm6, %v2477_v16, %v1480_v31 }
 0x2e0   : > { %v1489_v35 = vsel %vm1486_vm7, %v1488_v32, %v1484_v34 }
 0x2e1   : > { %v1492_v39 = vmul.f32 %v1489_v35, %v1409_v33 }
 0x2e3   : > { %v1494_v42 = vadd.f32 %v1492_v39, %v3034_v25 }
 0x2e5   : > { %v1496_v44 = vmul.f32 0.70710677, %v1494_v42 }
 0x2e7   : > { %v1497_v46 = vpack.c.bf16 %v1496_v44, %v1495_v38 }
 0x2e9   : > { %1574 = vmatmul.bf16.vlgmr.msrb.gmra.mxu2 %v1497_v46 }
 0x36c   : > { %v1575_v27 = vpop.f32.mrf.mxu2 }
 0x36d   : > { %v1576_v48 = vadd.f32 %v2461_v47, %v1575_v27 }
 0x36f   : > { %1580 = vst [vmem:[%s462_s21] sm:$0xff] %v1576_v48 }
 0x374   : > { %v1577_v24 = vpop.f32.mrf.mxu2 }
 0x375   : > { %v1578_v25 = vadd.f32 %v2461_v47, %v1577_v24 }
 0x377   : > { %1581 = vst [vmem:[%s462_s21 + $0x8] sm:$0xff] %v1578_v25 }
 0x378   : > { %2685 = shalt.err (!%p2682_p9)
}
 0x379   : > { %s2748_s17 = smov 128   ;;  %s2749_s4 = smov 8  }
 0x37a   : > { %2377 = dma.vmem_to_hbm [thread:$0]  (%p2900_p13), %s1596_s25, 256, %s1598_s24, %s1583_s11, %s2748_s17, %s2748_s17, %s2749_s4  }
 0x37b PF: > { %s1612_s6 = sand.u32 1, %s2724_s13   ;;  %p3133_p10 = scmp.ge.s32.totalorder %s2736_s16, 2 }
 0x37c   : > { %s1613_s26 = scalar_lea.sflag [#allocation4], %s1612_s6 }
 0x37d   : > { %p2400_p11 = pnand %p3133_p10, %p2905_p4 }
 0x37f   : > { %p2401_p0 = pneg %p2400_p11 }
 0x381   : > { %2719 = dma.done.wait (%p2401_p0), %s1613_s26, 256  }
 0x382   : > { %2721 = vsyncadd (%p2401_p0), %s1613_s26, 4294967040  ;;  %p26_p2 = scmp.ge.s32.totalorder %s2880_s30, 4   ;;  %s3134_s13 = smov %s2728_s14 }
 0x383   : > { %s3135_s14 = smov %s2732_s15  ;;  %s3136_s15 = smov %s2892_s28 }
 0x384   : > { %s3137_s16 = smov %s2880_s30  ;;  %28 = sbr.rel (!%p26_p2) target bundleno = 13 (0xd), region = 127 }
 0x389   :  { %1619 = vsyncpa [#allocation3], 1 }
 0x38a   :  { %1621 = vsyncpa [#allocation3 + $0x1], 1 }
 0x38b   :  { %1622 = vsyncpa [#allocation6], 1 }
 0x38c   :  { %1623 = vsyncpa [#allocation9], 1 }
 0x38d   :  { %1624 = vsyncpa [#allocation12], 1 }
 0x38e   :  { %1625 = vsyncpa [#allocation4], 1 }
 0x38f   :  { %1627 = vsyncpa [#allocation4 + $0x1], 1 }

</bundles_post_ra>
